<compile_context>
chip_gen: v7x
topology: tpu7x:2x2x1
jax: 0.10.0
libtpu: 0.0.40
codegen_flags: <defaults>
</compile_context>

<pallas_src>
import jax
import jax.numpy as jnp
from jax import lax
from jax.experimental import pallas as pl
from jax.experimental.pallas import tpu as pltpu

BN_EPS = 1e-5
_HALO = 64                             # chunk-rows of halo per tile (>= 61 needed)


def _layer_cfgs(hidden_size):
    # (C_in, C_out, K, stride, padding) -- matches RawEncoder.__init__
    h = hidden_size
    return [
        (1, h, 10, 5, 3),
        (h, h, 8, 4, 2),
        (h, h, 4, 2, 1),
        (h, h, 4, 2, 1),
        (h, h, 4, 2, 1),
    ]


def _round_up(x, m):
    return ((x + m - 1) // m) * m


# ---------------------------------------------------------------------------
# Fused kernel: 5x (conv via K strided-tap matmuls) + folded BN + ReLU
# ---------------------------------------------------------------------------
def _make_fused_kernel(*, t5, n_rows, out_lens):
    n1, n2, n3, n4, n5 = n_rows         # rows computed per stage per tile
    L1, L2, L3, L4 = out_lens           # true per-layer output lengths (for masking)
    nmain = 32 * t5

    def _layer(src_ref, w_ref, bn_ref, n_out, stride, first_row, valid_len):
        # out[j] = relu(bn( sum_k src[stride*j + k] @ W[k] ))   (K = w_ref.shape[0])
        acc = None
        for d in range(w_ref.shape[0]):
            if stride == 1:
                xs = src_ref[pl.ds(d, n_out), :]
            else:
                xs = src_ref[pl.ds(d, n_out, stride), :]
            part = jnp.dot(xs.astype(w_ref.dtype), w_ref[d],
                           preferred_element_type=jnp.float32)
            acc = part if acc is None else acc + part
        y = jnp.maximum(acc * bn_ref[0:1, :] + bn_ref[1:2, :], 0.0)
        if valid_len is not None:
            # Zero rows outside the true layer length: they act as the next
            # layer's conv zero-padding (and kill halo garbage).
            idx = first_row + lax.broadcasted_iota(jnp.int32, (n_out, 1), 0)
            y = jnp.where((idx >= 0) & (idx < valid_len), y, 0.0)
        return y

    def kernel(cm_ref, ch_ref,
               w1_ref, bn1_ref, w2_ref, bn2_ref, w3_ref, bn3_ref,
               w4_ref, bn4_ref, w5_ref, bn5_ref,
               o_ref, x1s, s1, s2, s3, s4):
        t = pl.program_id(1)

        # Stitch the pipelined main block and its halo into one contiguous
        # buffer of raw 5-sample chunks (row r <=> global chunk 32*t5*t - 30 + r).
        x1s[0:nmain, :] = cm_ref[0]
        x1s[nmain:nmain + _HALO, :] = ch_ref[0]

        # First global output row of each stage for this tile.
        a5 = t * t5
        a4 = 2 * a5 - 1
        a3 = 4 * a5 - 3
        a2 = 8 * a5 - 7
        a1 = 32 * a5 - 30

        s1[0:n1, :] = _layer(x1s, w1_ref, bn1_ref, n1, 1, a1, L1)   # K=10,S=5,P=3
        s2[0:n2, :] = _layer(s1, w2_ref, bn2_ref, n2, 4, a2, L2)    # K=8, S=4,P=2
        s3[0:n3, :] = _layer(s2, w3_ref, bn3_ref, n3, 2, a3, L3)    # K=4, S=2,P=1
        s4[0:n4, :] = _layer(s3, w4_ref, bn4_ref, n4, 2, a4, L4)    # K=4, S=2,P=1
        y5 = _layer(s4, w5_ref, bn5_ref, n5, 2, a5, None)           # K=4, S=2,P=1
        o_ref[0] = y5.astype(o_ref.dtype)

    return kernel


# ---------------------------------------------------------------------------
# Full RawEncoder forward (Pallas) + pure-JAX reference
# ---------------------------------------------------------------------------
def raw_encoder(x_ncl, params, hidden_size):
    """x_ncl: (B, 1, T) like PyTorch NCL. Returns (B, hidden_size, T // 160) f32."""
    cfgs = _layer_cfgs(hidden_size)
    h = hidden_size
    B = x_ncl.shape[0]
    T = x_ncl.shape[-1]

    # Per-layer output lengths (PyTorch Conv1d arithmetic).
    lens, l = [], T
    for (_, _, k, s, p) in cfgs:
        l = (l + 2 * p - k) // s + 1
        lens.append(l)
    L1, L2, L3, L4, L5 = lens

    # Final-output rows per grid step (even; multiple of 8 when L is tiled).
    if L5 <= 48:
        t5 = L5 + (L5 & 1)
        n_tiles = 1
    else:
        t5 = 32
        n_tiles = -(-L5 // t5)
    l5_pad = t5 * n_tiles

    # Per-tile row counts for each stage (receptive-field halos included).
    n5 = t5
    n4 = 2 * n5 + 2
    n3 = 2 * n4 + 2
    n2 = 2 * n3 + 2
    n1 = 4 * n2 + 4                     # layer-1 output rows per tile
    nmain = 32 * t5                     # raw chunks per main input block
    assert nmain % _HALO == 0 and nmain + _HALO >= n1 + 1

    # ---- raw audio -> non-overlapping 5-sample chunks (layer-1 stride) ----
    # chunk c holds padded samples [5c-3, 5c+2); the kernel's halo reaches chunk
    # index -30, so 30 zero chunk rows are prepended (pure pad+reshape, no im2col).
    x = x_ncl.reshape(B, T).astype(jnp.float32)
    n_valid = -(-(T + 3) // 5)
    x_pad = jnp.pad(x, ((0, 0), (3, n_valid * 5 - T - 3)))
    chunks = x_pad.reshape(B, n_valid, 5)
    z = max(nmain * n_tiles + _HALO, 30 + n_valid)
    chunks = jnp.pad(chunks, ((0, 0), (30, z - 30 - n_valid), (0, 0)))

    # ---- fold eval-mode BatchNorm into per-channel affine, reshape weights ---
    # TODO(synk): training-mode BN (batch statistics) not implemented.
    kernel_args = [chunks, chunks]      # main blocks + halo blocks (same array)
    for i, ((w, gamma, beta, mean, var), (cin, cout, k, s, p)) in enumerate(
            zip(params, cfgs)):
        scale = gamma / jnp.sqrt(var + BN_EPS)
        shift = beta - mean * scale
        bn = jnp.stack([scale, shift]).astype(jnp.float32)       # (2, C_out)
        wt = jnp.transpose(w, (2, 1, 0))                         # (K, C_in, C_out)
        if i == 0:
            wt = wt.reshape(2, 5, cout).astype(jnp.float32)      # two 5-sample taps
        else:
            wt = wt.astype(jnp.bfloat16)
        kernel_args += [wt, bn]

    halo_step = nmain // _HALO          # = t5 // 2 (t5 is even)
    in_specs = [
        pl.BlockSpec((1, nmain, 5), lambda b, t: (b, t, 0)),
        pl.BlockSpec((1, _HALO, 5), lambda b, t: (b, (t + 1) * halo_step, 0)),
    ]
    for a in kernel_args[2:]:
        # Grid-constant operands (weights / packed BN affine): whole-array blocks.
        # TODO(synk): pipeline_mode=pl.Buffered(1) would halve their VMEM.
        in_specs.append(pl.BlockSpec(a.shape, lambda b, t, n=a.ndim: (0,) * n))

    out = pl.pallas_call(
        _make_fused_kernel(t5=t5, n_rows=(n1, n2, n3, n4, n5),
                           out_lens=(L1, L2, L3, L4)),
        out_shape=jax.ShapeDtypeStruct((B, l5_pad, h), jnp.float32),
        grid=(B, n_tiles),
        in_specs=in_specs,
        out_specs=pl.BlockSpec((1, t5, h), lambda b, t: (b, t, 0)),
        scratch_shapes=[
            pltpu.VMEM((nmain + _HALO, 5), jnp.float32),         # stitched chunks
            pltpu.VMEM((_round_up(n1, 8), h), jnp.float32),      # layer-1 out
            pltpu.VMEM((_round_up(n2, 8), h), jnp.float32),      # layer-2 out
            pltpu.VMEM((_round_up(n3, 8), h), jnp.float32),      # layer-3 out
            pltpu.VMEM((_round_up(n4, 8), h), jnp.float32),      # layer-4 out
        ],
        compiler_params=pltpu.CompilerParams(
            dimension_semantics=("parallel", "parallel"),
            vmem_limit_bytes=48 * 1024 * 1024,
        ),
    )(*kernel_args)

    out = out[:, :L5, :]                # drop tile padding (no-op when aligned)
    return jnp.transpose(out, (0, 2, 1))  # -> (B, C, L_out)


def raw_encoder_ref(x_ncl, params, hidden_size):
    y = x_ncl
    for (w, gamma, beta, mean, var), (_, _, K, S, P) in zip(
        params, _layer_cfgs(hidden_size)
    ):
        y = jax.lax.conv_general_dilated(
            y, w, window_strides=(S,), padding=[(P, P)],
            dimension_numbers=("NCH", "OIH", "NCH"),
            precision=jax.lax.Precision.HIGHEST,
        )
        y = (y - mean[None, :, None]) / jnp.sqrt(var[None, :, None] + BN_EPS)
        y = y * gamma[None, :, None] + beta[None, :, None]
        y = jnp.maximum(y, 0.0)
    return y


def init_params(key, hidden_size):
    params = []
    for i, (cin, cout, K, _, _) in enumerate(_layer_cfgs(hidden_size)):
        kw, kg, kb, km, kv = jax.random.split(jax.random.fold_in(key, i), 5)
        fan_in = cin * K
        w = jax.random.normal(kw, (cout, cin, K), jnp.float32) / jnp.sqrt(fan_in)
        gamma = 1.0 + 0.1 * jax.random.normal(kg, (cout,), jnp.float32)
        beta = 0.1 * jax.random.normal(kb, (cout,), jnp.float32)
        mean = 0.1 * jax.random.normal(km, (cout,), jnp.float32)
        var = jax.random.uniform(kv, (cout,), jnp.float32, minval=0.5, maxval=1.5)
        params.append((w, gamma, beta, mean, var))
    return params


if __name__ == "__main__":
    B, T, H = 2, 1600, 32                 # small shapes; 1600 / 160 = 10
    key = jax.random.PRNGKey(0)
    k_x, k_p = jax.random.split(key)
    x = jax.random.normal(k_x, (B, 1, T), dtype=jnp.float32)
    params = init_params(k_p, H)

    y = jax.block_until_ready(raw_encoder(x, params, H))
    assert y.shape == (B, H, T // 160), y.shape

    y_ref = raw_encoder_ref(x, params, H)  # f32 reference (HIGHEST precision)

    # bf16 is only used for the layer 2-5 MXU operands (f32 accumulation,
    # f32 scratch, f32 layer 1); keep the conservative 5%-of-max tolerance.
    max_ref = float(jnp.max(jnp.abs(y_ref)))
    max_err = float(jnp.max(jnp.abs(y - y_ref)))
    tol = 5e-2 * max(1.0, max_ref)
    assert max_err < tol, f"mismatch vs reference: max_err={max_err}, tol={tol}"

    print("KERNEL_OK")
</pallas_src>

<mosaic_0001>
module attributes {stable_mosaic.version = 11 : i64} {
  func.func @kernel(%arg0: i32, %arg1: i32, %arg2: memref<1x320x5xf32, #tpu.memory_space<vmem>>, %arg3: memref<1x64x5xf32, #tpu.memory_space<vmem>>, %arg4: memref<2x5x32xf32, #tpu.memory_space<vmem>>, %arg5: memref<2x32xf32, #tpu.memory_space<vmem>>, %arg6: memref<8x32x32xbf16, #tpu.memory_space<vmem>>, %arg7: memref<2x32xf32, #tpu.memory_space<vmem>>, %arg8: memref<4x32x32xbf16, #tpu.memory_space<vmem>>, %arg9: memref<2x32xf32, #tpu.memory_space<vmem>>, %arg10: memref<4x32x32xbf16, #tpu.memory_space<vmem>>, %arg11: memref<2x32xf32, #tpu.memory_space<vmem>>, %arg12: memref<4x32x32xbf16, #tpu.memory_space<vmem>>, %arg13: memref<2x32xf32, #tpu.memory_space<vmem>>, %arg14: memref<1x10x32xf32, #tpu.memory_space<vmem>>, %arg15: memref<384x5xf32, #tpu.memory_space<vmem>>, %arg16: memref<384x32xf32, #tpu.memory_space<vmem>>, %arg17: memref<96x32xf32, #tpu.memory_space<vmem>>, %arg18: memref<48x32xf32, #tpu.memory_space<vmem>>, %arg19: memref<24x32xf32, #tpu.memory_space<vmem>>) attributes {dimension_semantics = [#tpu.dimension_semantics<parallel>, #tpu.dimension_semantics<parallel>], iteration_bounds = array<i64: 2, 1>, scalar_prefetch = 0 : i64, scratch_operands = 5 : i64, tpu.core_type = #tpu.core_type<tc>, window_params = [{transform_indices = @transform_0, window_bounds = array<i64: 1, 320, 5>}, {transform_indices = @transform_1, window_bounds = array<i64: 1, 64, 5>}, {pipeline_mode = #tpu.pipeline_mode<synchronous>, transform_indices = @transform_2, window_bounds = array<i64: 2, 5, 32>}, {pipeline_mode = #tpu.pipeline_mode<synchronous>, transform_indices = @transform_3, window_bounds = array<i64: 2, 32>}, {pipeline_mode = #tpu.pipeline_mode<synchronous>, transform_indices = @transform_4, window_bounds = array<i64: 8, 32, 32>}, {pipeline_mode = #tpu.pipeline_mode<synchronous>, transform_indices = @transform_5, window_bounds = array<i64: 2, 32>}, {pipeline_mode = #tpu.pipeline_mode<synchronous>, transform_indices = @transform_6, window_bounds = array<i64: 4, 32, 32>}, {pipeline_mode = #tpu.pipeline_mode<synchronous>, transform_indices = @transform_7, window_bounds = array<i64: 2, 32>}, {pipeline_mode = #tpu.pipeline_mode<synchronous>, transform_indices = @transform_8, window_bounds = array<i64: 4, 32, 32>}, {pipeline_mode = #tpu.pipeline_mode<synchronous>, transform_indices = @transform_9, window_bounds = array<i64: 2, 32>}, {pipeline_mode = #tpu.pipeline_mode<synchronous>, transform_indices = @transform_10, window_bounds = array<i64: 4, 32, 32>}, {pipeline_mode = #tpu.pipeline_mode<synchronous>, transform_indices = @transform_11, window_bounds = array<i64: 2, 32>}, {transform_indices = @transform_12, window_bounds = array<i64: 1, 10, 32>}]} {
    %c0 = arith.constant 0 : index
    %c0_0 = arith.constant 0 : index
    %c0_1 = arith.constant 0 : index
    %0 = vector.load %arg2[%c0, %c0_0, %c0_1] : memref<1x320x5xf32, #tpu.memory_space<vmem>>, vector<1x320x5xf32>
    %1 = vector.shape_cast %0 : vector<1x320x5xf32> to vector<320x5xf32>
    %c0_2 = arith.constant 0 : index
    %c0_3 = arith.constant 0 : index
    %2 = vector.load %arg15[%c0_2, %c0_3] : memref<384x5xf32, #tpu.memory_space<vmem>>, vector<320x5xf32>
    tpu.vector_store %arg15[%c0_2, %c0_3], %1 {strides = array<i32>} : memref<384x5xf32, #tpu.memory_space<vmem>>, vector<320x5xf32>,
    %c0_4 = arith.constant 0 : index
    %c0_5 = arith.constant 0 : index
    %c0_6 = arith.constant 0 : index
    %3 = vector.load %arg3[%c0_4, %c0_5, %c0_6] : memref<1x64x5xf32, #tpu.memory_space<vmem>>, vector<1x64x5xf32>
    %4 = vector.shape_cast %3 : vector<1x64x5xf32> to vector<64x5xf32>
    %c320 = arith.constant 320 : index
    %c0_7 = arith.constant 0 : index
    %5 = vector.load %arg15[%c320, %c0_7] : memref<384x5xf32, #tpu.memory_space<vmem>>, vector<64x5xf32>
    tpu.vector_store %arg15[%c320, %c0_7], %4 {strides = array<i32>} : memref<384x5xf32, #tpu.memory_space<vmem>>, vector<64x5xf32>,
    %c10_i32 = arith.constant 10 : i32
    %6 = arith.muli %arg1, %c10_i32 : i32
    %c2_i32 = arith.constant 2 : i32
    %7 = arith.muli %c2_i32, %6 : i32
    %c1_i32 = arith.constant 1 : i32
    %8 = arith.subi %7, %c1_i32 : i32
    %c4_i32 = arith.constant 4 : i32
    %9 = arith.muli %c4_i32, %6 : i32
    %c3_i32 = arith.constant 3 : i32
    %10 = arith.subi %9, %c3_i32 : i32
    %c8_i32 = arith.constant 8 : i32
    %11 = arith.muli %c8_i32, %6 : i32
    %c7_i32 = arith.constant 7 : i32
    %12 = arith.subi %11, %c7_i32 : i32
    %c32_i32 = arith.constant 32 : i32
    %13 = arith.muli %c32_i32, %6 : i32
    %c30_i32 = arith.constant 30 : i32
    %14 = arith.subi %13, %c30_i32 : i32
    %c0_8 = arith.constant 0 : index
    %c0_9 = arith.constant 0 : index
    %15 = vector.load %arg15[%c0_8, %c0_9] : memref<384x5xf32, #tpu.memory_space<vmem>>, vector<380x5xf32>
    %c0_10 = arith.constant 0 : index
    %c0_11 = arith.constant 0 : index
    %c0_12 = arith.constant 0 : index
    %16 = vector.load %arg4[%c0_10, %c0_11, %c0_12] : memref<2x5x32xf32, #tpu.memory_space<vmem>>, vector<1x5x32xf32>
    %17 = vector.shape_cast %16 : vector<1x5x32xf32> to vector<5x32xf32>
    %cst = arith.constant dense<0.000000e+00> : vector<380x32xf32>
    %18 = tpu.matmul %15, %17, %cst {dimension_numbers = #tpu.dot_dimension_numbers<[1], [0], [0], [1], [0, 0, 1, 1], [], []>} : vector<380x5xf32>, vector<5x32xf32>, vector<380x32xf32> -> vector<380x32xf32>
    %c1 = arith.constant 1 : index
    %c0_13 = arith.constant 0 : index
    %19 = vector.load %arg15[%c1, %c0_13] : memref<384x5xf32, #tpu.memory_space<vmem>>, vector<380x5xf32>
    %c1_14 = arith.constant 1 : index
    %c0_15 = arith.constant 0 : index
    %c0_16 = arith.constant 0 : index
    %20 = vector.load %arg4[%c1_14, %c0_15, %c0_16] : memref<2x5x32xf32, #tpu.memory_space<vmem>>, vector<1x5x32xf32>
    %21 = vector.shape_cast %20 : vector<1x5x32xf32> to vector<5x32xf32>
    %cst_17 = arith.constant dense<0.000000e+00> : vector<380x32xf32>
    %22 = tpu.matmul %19, %21, %cst_17 {dimension_numbers = #tpu.dot_dimension_numbers<[1], [0], [0], [1], [0, 0, 1, 1], [], []>} : vector<380x5xf32>, vector<5x32xf32>, vector<380x32xf32> -> vector<380x32xf32>
    %23 = arith.addf %18, %22 : vector<380x32xf32>
    %c0_18 = arith.constant 0 : index
    %c0_19 = arith.constant 0 : index
    %24 = vector.load %arg5[%c0_18, %c0_19] : memref<2x32xf32, #tpu.memory_space<vmem>>, vector<1x32xf32>
    %25 = vector.broadcast %24 : vector<1x32xf32> to vector<380x32xf32>
    %26 = arith.mulf %23, %25 : vector<380x32xf32>
    %c1_20 = arith.constant 1 : index
    %c0_21 = arith.constant 0 : index
    %27 = vector.load %arg5[%c1_20, %c0_21] : memref<2x32xf32, #tpu.memory_space<vmem>>, vector<1x32xf32>
    %28 = vector.broadcast %27 : vector<1x32xf32> to vector<380x32xf32>
    %29 = arith.addf %26, %28 : vector<380x32xf32>
    %cst_22 = arith.constant 0.000000e+00 : f32
    %30 = vector.broadcast %cst_22 : f32 to vector<380x32xf32>
    %31 = arith.maximumf %29, %30 : vector<380x32xf32>
    %32 = tpu.iota {dimensions = array<i32: 0>} : vector<380x1xi32>
    %33 = vector.broadcast %14 : i32 to vector<380x1xi32>
    %34 = arith.addi %33, %32 : vector<380x1xi32>
    %c0_i32 = arith.constant 0 : i32
    %35 = vector.broadcast %c0_i32 : i32 to vector<380x1xi32>
    %36 = arith.cmpi sge, %34, %35 : vector<380x1xi32>
    %c320_i32 = arith.constant 320 : i32
    %37 = vector.broadcast %c320_i32 : i32 to vector<380x1xi32>
    %38 = arith.cmpi slt, %34, %37 : vector<380x1xi32>
    %39 = arith.andi %36, %38 : vector<380x1xi1>
    %cst_23 = arith.constant 0.000000e+00 : f32
    %40 = vector.shape_cast %39 : vector<380x1xi1> to vector<380x1xi1>
    %41 = vector.broadcast %40 : vector<380x1xi1> to vector<380x32xi1>
    %42 = vector.broadcast %cst_23 : f32 to vector<380x32xf32>
    %43 = arith.select %41, %31, %42 : vector<380x32xi1>, vector<380x32xf32>
    %c0_24 = arith.constant 0 : index
    %c0_25 = arith.constant 0 : index
    %44 = vector.load %arg16[%c0_24, %c0_25] : memref<384x32xf32, #tpu.memory_space<vmem>>, vector<380x32xf32>
    tpu.vector_store %arg16[%c0_24, %c0_25], %43 {strides = array<i32>} : memref<384x32xf32, #tpu.memory_space<vmem>>, vector<380x32xf32>,
    %c0_26 = arith.constant 0 : index
    %c0_27 = arith.constant 0 : index
    %45 = tpu.strided_load %arg16[%c0_26, %c0_27] {strides = array<i32: 4, 1>} : memref<384x32xf32, #tpu.memory_space<vmem>>, vector<94x32xf32>
    %46 = arith.truncf %45 : vector<94x32xf32> to vector<94x32xbf16>
    %c0_28 = arith.constant 0 : index
    %c0_29 = arith.constant 0 : index
    %c0_30 = arith.constant 0 : index
    %47 = vector.load %arg6[%c0_28, %c0_29, %c0_30] : memref<8x32x32xbf16, #tpu.memory_space<vmem>>, vector<1x32x32xbf16>
    %48 = vector.shape_cast %47 : vector<1x32x32xbf16> to vector<32x32xbf16>
    %cst_31 = arith.constant dense<0.000000e+00> : vector<94x32xf32>
    %49 = tpu.matmul %46, %48, %cst_31 {dimension_numbers = #tpu.dot_dimension_numbers<[1], [0], [0], [1], [0, 0, 1, 1], [], []>} : vector<94x32xbf16>, vector<32x32xbf16>, vector<94x32xf32> -> vector<94x32xf32>
    %c1_32 = arith.constant 1 : index
    %c0_33 = arith.constant 0 : index
    %50 = tpu.strided_load %arg16[%c1_32, %c0_33] {strides = array<i32: 4, 1>} : memref<384x32xf32, #tpu.memory_space<vmem>>, vector<94x32xf32>
    %51 = arith.truncf %50 : vector<94x32xf32> to vector<94x32xbf16>
    %c1_34 = arith.constant 1 : index
    %c0_35 = arith.constant 0 : index
    %c0_36 = arith.constant 0 : index
    %52 = vector.load %arg6[%c1_34, %c0_35, %c0_36] : memref<8x32x32xbf16, #tpu.memory_space<vmem>>, vector<1x32x32xbf16>
    %53 = vector.shape_cast %52 : vector<1x32x32xbf16> to vector<32x32xbf16>
    %cst_37 = arith.constant dense<0.000000e+00> : vector<94x32xf32>
    %54 = tpu.matmul %51, %53, %cst_37 {dimension_numbers = #tpu.dot_dimension_numbers<[1], [0], [0], [1], [0, 0, 1, 1], [], []>} : vector<94x32xbf16>, vector<32x32xbf16>, vector<94x32xf32> -> vector<94x32xf32>
    %55 = arith.addf %49, %54 : vector<94x32xf32>
    %c2 = arith.constant 2 : index
    %c0_38 = arith.constant 0 : index
    %56 = tpu.strided_load %arg16[%c2, %c0_38] {strides = array<i32: 4, 1>} : memref<384x32xf32, #tpu.memory_space<vmem>>, vector<94x32xf32>
    %57 = arith.truncf %56 : vector<94x32xf32> to vector<94x32xbf16>
    %c2_39 = arith.constant 2 : index
    %c0_40 = arith.constant 0 : index
    %c0_41 = arith.constant 0 : index
    %58 = vector.load %arg6[%c2_39, %c0_40, %c0_41] : memref<8x32x32xbf16, #tpu.memory_space<vmem>>, vector<1x32x32xbf16>
    %59 = vector.shape_cast %58 : vector<1x32x32xbf16> to vector<32x32xbf16>
    %cst_42 = arith.constant dense<0.000000e+00> : vector<94x32xf32>
    %60 = tpu.matmul %57, %59, %cst_42 {dimension_numbers = #tpu.dot_dimension_numbers<[1], [0], [0], [1], [0, 0, 1, 1], [], []>} : vector<94x32xbf16>, vector<32x32xbf16>, vector<94x32xf32> -> vector<94x32xf32>
    %61 = arith.addf %55, %60 : vector<94x32xf32>
    %c3 = arith.constant 3 : index
    %c0_43 = arith.constant 0 : index
    %62 = tpu.strided_load %arg16[%c3, %c0_43] {strides = array<i32: 4, 1>} : memref<384x32xf32, #tpu.memory_space<vmem>>, vector<94x32xf32>
    %63 = arith.truncf %62 : vector<94x32xf32> to vector<94x32xbf16>
    %c3_44 = arith.constant 3 : index
    %c0_45 = arith.constant 0 : index
    %c0_46 = arith.constant 0 : index
    %64 = vector.load %arg6[%c3_44, %c0_45, %c0_46] : memref<8x32x32xbf16, #tpu.memory_space<vmem>>, vector<1x32x32xbf16>
    %65 = vector.shape_cast %64 : vector<1x32x32xbf16> to vector<32x32xbf16>
    %cst_47 = arith.constant dense<0.000000e+00> : vector<94x32xf32>
    %66 = tpu.matmul %63, %65, %cst_47 {dimension_numbers = #tpu.dot_dimension_numbers<[1], [0], [0], [1], [0, 0, 1, 1], [], []>} : vector<94x32xbf16>, vector<32x32xbf16>, vector<94x32xf32> -> vector<94x32xf32>
    %67 = arith.addf %61, %66 : vector<94x32xf32>
    %c4 = arith.constant 4 : index
    %c0_48 = arith.constant 0 : index
    %68 = tpu.strided_load %arg16[%c4, %c0_48] {strides = array<i32: 4, 1>} : memref<384x32xf32, #tpu.memory_space<vmem>>, vector<94x32xf32>
    %69 = arith.truncf %68 : vector<94x32xf32> to vector<94x32xbf16>
    %c4_49 = arith.constant 4 : index
    %c0_50 = arith.constant 0 : index
    %c0_51 = arith.constant 0 : index
    %70 = vector.load %arg6[%c4_49, %c0_50, %c0_51] : memref<8x32x32xbf16, #tpu.memory_space<vmem>>, vector<1x32x32xbf16>
    %71 = vector.shape_cast %70 : vector<1x32x32xbf16> to vector<32x32xbf16>
    %cst_52 = arith.constant dense<0.000000e+00> : vector<94x32xf32>
    %72 = tpu.matmul %69, %71, %cst_52 {dimension_numbers = #tpu.dot_dimension_numbers<[1], [0], [0], [1], [0, 0, 1, 1], [], []>} : vector<94x32xbf16>, vector<32x32xbf16>, vector<94x32xf32> -> vector<94x32xf32>
    %73 = arith.addf %67, %72 : vector<94x32xf32>
    %c5 = arith.constant 5 : index
    %c0_53 = arith.constant 0 : index
    %74 = tpu.strided_load %arg16[%c5, %c0_53] {strides = array<i32: 4, 1>} : memref<384x32xf32, #tpu.memory_space<vmem>>, vector<94x32xf32>
    %75 = arith.truncf %74 : vector<94x32xf32> to vector<94x32xbf16>
    %c5_54 = arith.constant 5 : index
    %c0_55 = arith.constant 0 : index
    %c0_56 = arith.constant 0 : index
    %76 = vector.load %arg6[%c5_54, %c0_55, %c0_56] : memref<8x32x32xbf16, #tpu.memory_space<vmem>>, vector<1x32x32xbf16>
    %77 = vector.shape_cast %76 : vector<1x32x32xbf16> to vector<32x32xbf16>
    %cst_57 = arith.constant dense<0.000000e+00> : vector<94x32xf32>
    %78 = tpu.matmul %75, %77, %cst_57 {dimension_numbers = #tpu.dot_dimension_numbers<[1], [0], [0], [1], [0, 0, 1, 1], [], []>} : vector<94x32xbf16>, vector<32x32xbf16>, vector<94x32xf32> -> vector<94x32xf32>
    %79 = arith.addf %73, %78 : vector<94x32xf32>
    %c6 = arith.constant 6 : index
    %c0_58 = arith.constant 0 : index
    %80 = tpu.strided_load %arg16[%c6, %c0_58] {strides = array<i32: 4, 1>} : memref<384x32xf32, #tpu.memory_space<vmem>>, vector<94x32xf32>
    %81 = arith.truncf %80 : vector<94x32xf32> to vector<94x32xbf16>
    %c6_59 = arith.constant 6 : index
    %c0_60 = arith.constant 0 : index
    %c0_61 = arith.constant 0 : index
    %82 = vector.load %arg6[%c6_59, %c0_60, %c0_61] : memref<8x32x32xbf16, #tpu.memory_space<vmem>>, vector<1x32x32xbf16>
    %83 = vector.shape_cast %82 : vector<1x32x32xbf16> to vector<32x32xbf16>
    %cst_62 = arith.constant dense<0.000000e+00> : vector<94x32xf32>
    %84 = tpu.matmul %81, %83, %cst_62 {dimension_numbers = #tpu.dot_dimension_numbers<[1], [0], [0], [1], [0, 0, 1, 1], [], []>} : vector<94x32xbf16>, vector<32x32xbf16>, vector<94x32xf32> -> vector<94x32xf32>
    %85 = arith.addf %79, %84 : vector<94x32xf32>
    %c7 = arith.constant 7 : index
    %c0_63 = arith.constant 0 : index
    %86 = tpu.strided_load %arg16[%c7, %c0_63] {strides = array<i32: 4, 1>} : memref<384x32xf32, #tpu.memory_space<vmem>>, vector<94x32xf32>
    %87 = arith.truncf %86 : vector<94x32xf32> to vector<94x32xbf16>
    %c7_64 = arith.constant 7 : index
    %c0_65 = arith.constant 0 : index
    %c0_66 = arith.constant 0 : index
    %88 = vector.load %arg6[%c7_64, %c0_65, %c0_66] : memref<8x32x32xbf16, #tpu.memory_space<vmem>>, vector<1x32x32xbf16>
    %89 = vector.shape_cast %88 : vector<1x32x32xbf16> to vector<32x32xbf16>
    %cst_67 = arith.constant dense<0.000000e+00> : vector<94x32xf32>
    %90 = tpu.matmul %87, %89, %cst_67 {dimension_numbers = #tpu.dot_dimension_numbers<[1], [0], [0], [1], [0, 0, 1, 1], [], []>} : vector<94x32xbf16>, vector<32x32xbf16>, vector<94x32xf32> -> vector<94x32xf32>
    %91 = arith.addf %85, %90 : vector<94x32xf32>
    %c0_68 = arith.constant 0 : index
    %c0_69 = arith.constant 0 : index
    %92 = vector.load %arg7[%c0_68, %c0_69] : memref<2x32xf32, #tpu.memory_space<vmem>>, vector<1x32xf32>
    %93 = vector.broadcast %92 : vector<1x32xf32> to vector<94x32xf32>
    %94 = arith.mulf %91, %93 : vector<94x32xf32>
    %c1_70 = arith.constant 1 : index
    %c0_71 = arith.constant 0 : index
    %95 = vector.load %arg7[%c1_70, %c0_71] : memref<2x32xf32, #tpu.memory_space<vmem>>, vector<1x32xf32>
    %96 = vector.broadcast %95 : vector<1x32xf32> to vector<94x32xf32>
    %97 = arith.addf %94, %96 : vector<94x32xf32>
    %cst_72 = arith.constant 0.000000e+00 : f32
    %98 = vector.broadcast %cst_72 : f32 to vector<94x32xf32>
    %99 = arith.maximumf %97, %98 : vector<94x32xf32>
    %100 = tpu.iota {dimensions = array<i32: 0>} : vector<94x1xi32>
    %101 = vector.broadcast %12 : i32 to vector<94x1xi32>
    %102 = arith.addi %101, %100 : vector<94x1xi32>
    %c0_i32_73 = arith.constant 0 : i32
    %103 = vector.broadcast %c0_i32_73 : i32 to vector<94x1xi32>
    %104 = arith.cmpi sge, %102, %103 : vector<94x1xi32>
    %c80_i32 = arith.constant 80 : i32
    %105 = vector.broadcast %c80_i32 : i32 to vector<94x1xi32>
    %106 = arith.cmpi slt, %102, %105 : vector<94x1xi32>
    %107 = arith.andi %104, %106 : vector<94x1xi1>
    %cst_74 = arith.constant 0.000000e+00 : f32
    %108 = vector.shape_cast %107 : vector<94x1xi1> to vector<94x1xi1>
    %109 = vector.broadcast %108 : vector<94x1xi1> to vector<94x32xi1>
    %110 = vector.broadcast %cst_74 : f32 to vector<94x32xf32>
    %111 = arith.select %109, %99, %110 : vector<94x32xi1>, vector<94x32xf32>
    %c0_75 = arith.constant 0 : index
    %c0_76 = arith.constant 0 : index
    %112 = vector.load %arg17[%c0_75, %c0_76] : memref<96x32xf32, #tpu.memory_space<vmem>>, vector<94x32xf32>
    tpu.vector_store %arg17[%c0_75, %c0_76], %111 {strides = array<i32>} : memref<96x32xf32, #tpu.memory_space<vmem>>, vector<94x32xf32>,
    %c0_77 = arith.constant 0 : index
    %c0_78 = arith.constant 0 : index
    %113 = tpu.strided_load %arg17[%c0_77, %c0_78] {strides = array<i32: 2, 1>} : memref<96x32xf32, #tpu.memory_space<vmem>>, vector<46x32xf32>
    %114 = arith.truncf %113 : vector<46x32xf32> to vector<46x32xbf16>
    %c0_79 = arith.constant 0 : index
    %c0_80 = arith.constant 0 : index
    %c0_81 = arith.constant 0 : index
    %115 = vector.load %arg8[%c0_79, %c0_80, %c0_81] : memref<4x32x32xbf16, #tpu.memory_space<vmem>>, vector<1x32x32xbf16>
    %116 = vector.shape_cast %115 : vector<1x32x32xbf16> to vector<32x32xbf16>
    %cst_82 = arith.constant dense<0.000000e+00> : vector<46x32xf32>
    %117 = tpu.matmul %114, %116, %cst_82 {dimension_numbers = #tpu.dot_dimension_numbers<[1], [0], [0], [1], [0, 0, 1, 1], [], []>} : vector<46x32xbf16>, vector<32x32xbf16>, vector<46x32xf32> -> vector<46x32xf32>
    %c1_83 = arith.constant 1 : index
    %c0_84 = arith.constant 0 : index
    %118 = tpu.strided_load %arg17[%c1_83, %c0_84] {strides = array<i32: 2, 1>} : memref<96x32xf32, #tpu.memory_space<vmem>>, vector<46x32xf32>
    %119 = arith.truncf %118 : vector<46x32xf32> to vector<46x32xbf16>
    %c1_85 = arith.constant 1 : index
    %c0_86 = arith.constant 0 : index
    %c0_87 = arith.constant 0 : index
    %120 = vector.load %arg8[%c1_85, %c0_86, %c0_87] : memref<4x32x32xbf16, #tpu.memory_space<vmem>>, vector<1x32x32xbf16>
    %121 = vector.shape_cast %120 : vector<1x32x32xbf16> to vector<32x32xbf16>
    %cst_88 = arith.constant dense<0.000000e+00> : vector<46x32xf32>
    %122 = tpu.matmul %119, %121, %cst_88 {dimension_numbers = #tpu.dot_dimension_numbers<[1], [0], [0], [1], [0, 0, 1, 1], [], []>} : vector<46x32xbf16>, vector<32x32xbf16>, vector<46x32xf32> -> vector<46x32xf32>
    %123 = arith.addf %117, %122 : vector<46x32xf32>
    %c2_89 = arith.constant 2 : index
    %c0_90 = arith.constant 0 : index
    %124 = tpu.strided_load %arg17[%c2_89, %c0_90] {strides = array<i32: 2, 1>} : memref<96x32xf32, #tpu.memory_space<vmem>>, vector<46x32xf32>
    %125 = arith.truncf %124 : vector<46x32xf32> to vector<46x32xbf16>
    %c2_91 = arith.constant 2 : index
    %c0_92 = arith.constant 0 : index
    %c0_93 = arith.constant 0 : index
    %126 = vector.load %arg8[%c2_91, %c0_92, %c0_93] : memref<4x32x32xbf16, #tpu.memory_space<vmem>>, vector<1x32x32xbf16>
    %127 = vector.shape_cast %126 : vector<1x32x32xbf16> to vector<32x32xbf16>
    %cst_94 = arith.constant dense<0.000000e+00> : vector<46x32xf32>
    %128 = tpu.matmul %125, %127, %cst_94 {dimension_numbers = #tpu.dot_dimension_numbers<[1], [0], [0], [1], [0, 0, 1, 1], [], []>} : vector<46x32xbf16>, vector<32x32xbf16>, vector<46x32xf32> -> vector<46x32xf32>
    %129 = arith.addf %123, %128 : vector<46x32xf32>
    %c3_95 = arith.constant 3 : index
    %c0_96 = arith.constant 0 : index
    %130 = tpu.strided_load %arg17[%c3_95, %c0_96] {strides = array<i32: 2, 1>} : memref<96x32xf32, #tpu.memory_space<vmem>>, vector<46x32xf32>
    %131 = arith.truncf %130 : vector<46x32xf32> to vector<46x32xbf16>
    %c3_97 = arith.constant 3 : index
    %c0_98 = arith.constant 0 : index
    %c0_99 = arith.constant 0 : index
    %132 = vector.load %arg8[%c3_97, %c0_98, %c0_99] : memref<4x32x32xbf16, #tpu.memory_space<vmem>>, vector<1x32x32xbf16>
    %133 = vector.shape_cast %132 : vector<1x32x32xbf16> to vector<32x32xbf16>
    %cst_100 = arith.constant dense<0.000000e+00> : vector<46x32xf32>
    %134 = tpu.matmul %131, %133, %cst_100 {dimension_numbers = #tpu.dot_dimension_numbers<[1], [0], [0], [1], [0, 0, 1, 1], [], []>} : vector<46x32xbf16>, vector<32x32xbf16>, vector<46x32xf32> -> vector<46x32xf32>
    %135 = arith.addf %129, %134 : vector<46x32xf32>
    %c0_101 = arith.constant 0 : index
    %c0_102 = arith.constant 0 : index
    %136 = vector.load %arg9[%c0_101, %c0_102] : memref<2x32xf32, #tpu.memory_space<vmem>>, vector<1x32xf32>
    %137 = vector.broadcast %136 : vector<1x32xf32> to vector<46x32xf32>
    %138 = arith.mulf %135, %137 : vector<46x32xf32>
    %c1_103 = arith.constant 1 : index
    %c0_104 = arith.constant 0 : index
    %139 = vector.load %arg9[%c1_103, %c0_104] : memref<2x32xf32, #tpu.memory_space<vmem>>, vector<1x32xf32>
    %140 = vector.broadcast %139 : vector<1x32xf32> to vector<46x32xf32>
    %141 = arith.addf %138, %140 : vector<46x32xf32>
    %cst_105 = arith.constant 0.000000e+00 : f32
    %142 = vector.broadcast %cst_105 : f32 to vector<46x32xf32>
    %143 = arith.maximumf %141, %142 : vector<46x32xf32>
    %144 = tpu.iota {dimensions = array<i32: 0>} : vector<46x1xi32>
    %145 = vector.broadcast %10 : i32 to vector<46x1xi32>
    %146 = arith.addi %145, %144 : vector<46x1xi32>
    %c0_i32_106 = arith.constant 0 : i32
    %147 = vector.broadcast %c0_i32_106 : i32 to vector<46x1xi32>
    %148 = arith.cmpi sge, %146, %147 : vector<46x1xi32>
    %c40_i32 = arith.constant 40 : i32
    %149 = vector.broadcast %c40_i32 : i32 to vector<46x1xi32>
    %150 = arith.cmpi slt, %146, %149 : vector<46x1xi32>
    %151 = arith.andi %148, %150 : vector<46x1xi1>
    %cst_107 = arith.constant 0.000000e+00 : f32
    %152 = vector.shape_cast %151 : vector<46x1xi1> to vector<46x1xi1>
    %153 = vector.broadcast %152 : vector<46x1xi1> to vector<46x32xi1>
    %154 = vector.broadcast %cst_107 : f32 to vector<46x32xf32>
    %155 = arith.select %153, %143, %154 : vector<46x32xi1>, vector<46x32xf32>
    %c0_108 = arith.constant 0 : index
    %c0_109 = arith.constant 0 : index
    %156 = vector.load %arg18[%c0_108, %c0_109] : memref<48x32xf32, #tpu.memory_space<vmem>>, vector<46x32xf32>
    tpu.vector_store %arg18[%c0_108, %c0_109], %155 {strides = array<i32>} : memref<48x32xf32, #tpu.memory_space<vmem>>, vector<46x32xf32>,
    %c0_110 = arith.constant 0 : index
    %c0_111 = arith.constant 0 : index
    %157 = tpu.strided_load %arg18[%c0_110, %c0_111] {strides = array<i32: 2, 1>} : memref<48x32xf32, #tpu.memory_space<vmem>>, vector<22x32xf32>
    %158 = arith.truncf %157 : vector<22x32xf32> to vector<22x32xbf16>
    %c0_112 = arith.constant 0 : index
    %c0_113 = arith.constant 0 : index
    %c0_114 = arith.constant 0 : index
    %159 = vector.load %arg10[%c0_112, %c0_113, %c0_114] : memref<4x32x32xbf16, #tpu.memory_space<vmem>>, vector<1x32x32xbf16>
    %160 = vector.shape_cast %159 : vector<1x32x32xbf16> to vector<32x32xbf16>
    %cst_115 = arith.constant dense<0.000000e+00> : vector<22x32xf32>
    %161 = tpu.matmul %158, %160, %cst_115 {dimension_numbers = #tpu.dot_dimension_numbers<[1], [0], [0], [1], [0, 0, 1, 1], [], []>} : vector<22x32xbf16>, vector<32x32xbf16>, vector<22x32xf32> -> vector<22x32xf32>
    %c1_116 = arith.constant 1 : index
    %c0_117 = arith.constant 0 : index
    %162 = tpu.strided_load %arg18[%c1_116, %c0_117] {strides = array<i32: 2, 1>} : memref<48x32xf32, #tpu.memory_space<vmem>>, vector<22x32xf32>
    %163 = arith.truncf %162 : vector<22x32xf32> to vector<22x32xbf16>
    %c1_118 = arith.constant 1 : index
    %c0_119 = arith.constant 0 : index
    %c0_120 = arith.constant 0 : index
    %164 = vector.load %arg10[%c1_118, %c0_119, %c0_120] : memref<4x32x32xbf16, #tpu.memory_space<vmem>>, vector<1x32x32xbf16>
    %165 = vector.shape_cast %164 : vector<1x32x32xbf16> to vector<32x32xbf16>
    %cst_121 = arith.constant dense<0.000000e+00> : vector<22x32xf32>
    %166 = tpu.matmul %163, %165, %cst_121 {dimension_numbers = #tpu.dot_dimension_numbers<[1], [0], [0], [1], [0, 0, 1, 1], [], []>} : vector<22x32xbf16>, vector<32x32xbf16>, vector<22x32xf32> -> vector<22x32xf32>
    %167 = arith.addf %161, %166 : vector<22x32xf32>
    %c2_122 = arith.constant 2 : index
    %c0_123 = arith.constant 0 : index
    %168 = tpu.strided_load %arg18[%c2_122, %c0_123] {strides = array<i32: 2, 1>} : memref<48x32xf32, #tpu.memory_space<vmem>>, vector<22x32xf32>
    %169 = arith.truncf %168 : vector<22x32xf32> to vector<22x32xbf16>
    %c2_124 = arith.constant 2 : index
    %c0_125 = arith.constant 0 : index
    %c0_126 = arith.constant 0 : index
    %170 = vector.load %arg10[%c2_124, %c0_125, %c0_126] : memref<4x32x32xbf16, #tpu.memory_space<vmem>>, vector<1x32x32xbf16>
    %171 = vector.shape_cast %170 : vector<1x32x32xbf16> to vector<32x32xbf16>
    %cst_127 = arith.constant dense<0.000000e+00> : vector<22x32xf32>
    %172 = tpu.matmul %169, %171, %cst_127 {dimension_numbers = #tpu.dot_dimension_numbers<[1], [0], [0], [1], [0, 0, 1, 1], [], []>} : vector<22x32xbf16>, vector<32x32xbf16>, vector<22x32xf32> -> vector<22x32xf32>
    %173 = arith.addf %167, %172 : vector<22x32xf32>
    %c3_128 = arith.constant 3 : index
    %c0_129 = arith.constant 0 : index
    %174 = tpu.strided_load %arg18[%c3_128, %c0_129] {strides = array<i32: 2, 1>} : memref<48x32xf32, #tpu.memory_space<vmem>>, vector<22x32xf32>
    %175 = arith.truncf %174 : vector<22x32xf32> to vector<22x32xbf16>
    %c3_130 = arith.constant 3 : index
    %c0_131 = arith.constant 0 : index
    %c0_132 = arith.constant 0 : index
    %176 = vector.load %arg10[%c3_130, %c0_131, %c0_132] : memref<4x32x32xbf16, #tpu.memory_space<vmem>>, vector<1x32x32xbf16>
    %177 = vector.shape_cast %176 : vector<1x32x32xbf16> to vector<32x32xbf16>
    %cst_133 = arith.constant dense<0.000000e+00> : vector<22x32xf32>
    %178 = tpu.matmul %175, %177, %cst_133 {dimension_numbers = #tpu.dot_dimension_numbers<[1], [0], [0], [1], [0, 0, 1, 1], [], []>} : vector<22x32xbf16>, vector<32x32xbf16>, vector<22x32xf32> -> vector<22x32xf32>
    %179 = arith.addf %173, %178 : vector<22x32xf32>
    %c0_134 = arith.constant 0 : index
    %c0_135 = arith.constant 0 : index
    %180 = vector.load %arg11[%c0_134, %c0_135] : memref<2x32xf32, #tpu.memory_space<vmem>>, vector<1x32xf32>
    %181 = vector.broadcast %180 : vector<1x32xf32> to vector<22x32xf32>
    %182 = arith.mulf %179, %181 : vector<22x32xf32>
    %c1_136 = arith.constant 1 : index
    %c0_137 = arith.constant 0 : index
    %183 = vector.load %arg11[%c1_136, %c0_137] : memref<2x32xf32, #tpu.memory_space<vmem>>, vector<1x32xf32>
    %184 = vector.broadcast %183 : vector<1x32xf32> to vector<22x32xf32>
    %185 = arith.addf %182, %184 : vector<22x32xf32>
    %cst_138 = arith.constant 0.000000e+00 : f32
    %186 = vector.broadcast %cst_138 : f32 to vector<22x32xf32>
    %187 = arith.maximumf %185, %186 : vector<22x32xf32>
    %188 = tpu.iota {dimensions = array<i32: 0>} : vector<22x1xi32>
    %189 = vector.broadcast %8 : i32 to vector<22x1xi32>
    %190 = arith.addi %189, %188 : vector<22x1xi32>
    %c0_i32_139 = arith.constant 0 : i32
    %191 = vector.broadcast %c0_i32_139 : i32 to vector<22x1xi32>
    %192 = arith.cmpi sge, %190, %191 : vector<22x1xi32>
    %c20_i32 = arith.constant 20 : i32
    %193 = vector.broadcast %c20_i32 : i32 to vector<22x1xi32>
    %194 = arith.cmpi slt, %190, %193 : vector<22x1xi32>
    %195 = arith.andi %192, %194 : vector<22x1xi1>
    %cst_140 = arith.constant 0.000000e+00 : f32
    %196 = vector.shape_cast %195 : vector<22x1xi1> to vector<22x1xi1>
    %197 = vector.broadcast %196 : vector<22x1xi1> to vector<22x32xi1>
    %198 = vector.broadcast %cst_140 : f32 to vector<22x32xf32>
    %199 = arith.select %197, %187, %198 : vector<22x32xi1>, vector<22x32xf32>
    %c0_141 = arith.constant 0 : index
    %c0_142 = arith.constant 0 : index
    %200 = vector.load %arg19[%c0_141, %c0_142] : memref<24x32xf32, #tpu.memory_space<vmem>>, vector<22x32xf32>
    tpu.vector_store %arg19[%c0_141, %c0_142], %199 {strides = array<i32>} : memref<24x32xf32, #tpu.memory_space<vmem>>, vector<22x32xf32>,
    %c0_143 = arith.constant 0 : index
    %c0_144 = arith.constant 0 : index
    %201 = tpu.strided_load %arg19[%c0_143, %c0_144] {strides = array<i32: 2, 1>} : memref<24x32xf32, #tpu.memory_space<vmem>>, vector<10x32xf32>
    %202 = arith.truncf %201 : vector<10x32xf32> to vector<10x32xbf16>
    %c0_145 = arith.constant 0 : index
    %c0_146 = arith.constant 0 : index
    %c0_147 = arith.constant 0 : index
    %203 = vector.load %arg12[%c0_145, %c0_146, %c0_147] : memref<4x32x32xbf16, #tpu.memory_space<vmem>>, vector<1x32x32xbf16>
    %204 = vector.shape_cast %203 : vector<1x32x32xbf16> to vector<32x32xbf16>
    %cst_148 = arith.constant dense<0.000000e+00> : vector<10x32xf32>
    %205 = tpu.matmul %202, %204, %cst_148 {dimension_numbers = #tpu.dot_dimension_numbers<[1], [0], [0], [1], [0, 0, 1, 1], [], []>} : vector<10x32xbf16>, vector<32x32xbf16>, vector<10x32xf32> -> vector<10x32xf32>
    %c1_149 = arith.constant 1 : index
    %c0_150 = arith.constant 0 : index
    %206 = tpu.strided_load %arg19[%c1_149, %c0_150] {strides = array<i32: 2, 1>} : memref<24x32xf32, #tpu.memory_space<vmem>>, vector<10x32xf32>
    %207 = arith.truncf %206 : vector<10x32xf32> to vector<10x32xbf16>
    %c1_151 = arith.constant 1 : index
    %c0_152 = arith.constant 0 : index
    %c0_153 = arith.constant 0 : index
    %208 = vector.load %arg12[%c1_151, %c0_152, %c0_153] : memref<4x32x32xbf16, #tpu.memory_space<vmem>>, vector<1x32x32xbf16>
    %209 = vector.shape_cast %208 : vector<1x32x32xbf16> to vector<32x32xbf16>
    %cst_154 = arith.constant dense<0.000000e+00> : vector<10x32xf32>
    %210 = tpu.matmul %207, %209, %cst_154 {dimension_numbers = #tpu.dot_dimension_numbers<[1], [0], [0], [1], [0, 0, 1, 1], [], []>} : vector<10x32xbf16>, vector<32x32xbf16>, vector<10x32xf32> -> vector<10x32xf32>
    %211 = arith.addf %205, %210 : vector<10x32xf32>
    %c2_155 = arith.constant 2 : index
    %c0_156 = arith.constant 0 : index
    %212 = tpu.strided_load %arg19[%c2_155, %c0_156] {strides = array<i32: 2, 1>} : memref<24x32xf32, #tpu.memory_space<vmem>>, vector<10x32xf32>
    %213 = arith.truncf %212 : vector<10x32xf32> to vector<10x32xbf16>
    %c2_157 = arith.constant 2 : index
    %c0_158 = arith.constant 0 : index
    %c0_159 = arith.constant 0 : index
    %214 = vector.load %arg12[%c2_157, %c0_158, %c0_159] : memref<4x32x32xbf16, #tpu.memory_space<vmem>>, vector<1x32x32xbf16>
    %215 = vector.shape_cast %214 : vector<1x32x32xbf16> to vector<32x32xbf16>
    %cst_160 = arith.constant dense<0.000000e+00> : vector<10x32xf32>
    %216 = tpu.matmul %213, %215, %cst_160 {dimension_numbers = #tpu.dot_dimension_numbers<[1], [0], [0], [1], [0, 0, 1, 1], [], []>} : vector<10x32xbf16>, vector<32x32xbf16>, vector<10x32xf32> -> vector<10x32xf32>
    %217 = arith.addf %211, %216 : vector<10x32xf32>
    %c3_161 = arith.constant 3 : index
    %c0_162 = arith.constant 0 : index
    %218 = tpu.strided_load %arg19[%c3_161, %c0_162] {strides = array<i32: 2, 1>} : memref<24x32xf32, #tpu.memory_space<vmem>>, vector<10x32xf32>
    %219 = arith.truncf %218 : vector<10x32xf32> to vector<10x32xbf16>
    %c3_163 = arith.constant 3 : index
    %c0_164 = arith.constant 0 : index
    %c0_165 = arith.constant 0 : index
    %220 = vector.load %arg12[%c3_163, %c0_164, %c0_165] : memref<4x32x32xbf16, #tpu.memory_space<vmem>>, vector<1x32x32xbf16>
    %221 = vector.shape_cast %220 : vector<1x32x32xbf16> to vector<32x32xbf16>
    %cst_166 = arith.constant dense<0.000000e+00> : vector<10x32xf32>
    %222 = tpu.matmul %219, %221, %cst_166 {dimension_numbers = #tpu.dot_dimension_numbers<[1], [0], [0], [1], [0, 0, 1, 1], [], []>} : vector<10x32xbf16>, vector<32x32xbf16>, vector<10x32xf32> -> vector<10x32xf32>
    %223 = arith.addf %217, %222 : vector<10x32xf32>
    %c0_167 = arith.constant 0 : index
    %c0_168 = arith.constant 0 : index
    %224 = vector.load %arg13[%c0_167, %c0_168] : memref<2x32xf32, #tpu.memory_space<vmem>>, vector<1x32xf32>
    %225 = vector.broadcast %224 : vector<1x32xf32> to vector<10x32xf32>
    %226 = arith.mulf %223, %225 : vector<10x32xf32>
    %c1_169 = arith.constant 1 : index
    %c0_170 = arith.constant 0 : index
    %227 = vector.load %arg13[%c1_169, %c0_170] : memref<2x32xf32, #tpu.memory_space<vmem>>, vector<1x32xf32>
    %228 = vector.broadcast %227 : vector<1x32xf32> to vector<10x32xf32>
    %229 = arith.addf %226, %228 : vector<10x32xf32>
    %cst_171 = arith.constant 0.000000e+00 : f32
    %230 = vector.broadcast %cst_171 : f32 to vector<10x32xf32>
    %231 = arith.maximumf %229, %230 : vector<10x32xf32>
    %c0_172 = arith.constant 0 : index
    %c0_173 = arith.constant 0 : index
    %c0_174 = arith.constant 0 : index
    %232 = vector.load %arg14[%c0_172, %c0_173, %c0_174] : memref<1x10x32xf32, #tpu.memory_space<vmem>>, vector<1x10x32xf32>
    %233 = vector.shape_cast %232 : vector<1x10x32xf32> to vector<10x32xf32>
    %234 = vector.shape_cast %231 : vector<10x32xf32> to vector<1x10x32xf32>
    tpu.vector_store %arg14[%c0_172, %c0_173, %c0_174], %234 {strides = array<i32>} : memref<1x10x32xf32, #tpu.memory_space<vmem>>, vector<1x10x32xf32>,
    return
  }
  func.func @transform_0(%arg0: i32, %arg1: i32) -> (i32, i32, i32) {
    %c0_i32 = arith.constant 0 : i32
    %c0_i32_0 = arith.constant 0 : i32
    return %arg0, %arg1, %c0_i32 : i32, i32, i32
  }
  func.func @transform_1(%arg0: i32, %arg1: i32) -> (i32, i32, i32) {
    %c1_i32 = arith.constant 1 : i32
    %0 = arith.addi %arg1, %c1_i32 : i32
    %c5_i32 = arith.constant 5 : i32
    %1 = arith.muli %0, %c5_i32 : i32
    %c0_i32 = arith.constant 0 : i32
    %c0_i32_0 = arith.constant 0 : i32
    return %arg0, %1, %c0_i32 : i32, i32, i32
  }
  func.func @transform_2(%arg0: i32, %arg1: i32) -> (i32, i32, i32) {
    %c0_i32 = arith.constant 0 : i32
    %c0_i32_0 = arith.constant 0 : i32
    %c0_i32_1 = arith.constant 0 : i32
    %c0_i32_2 = arith.constant 0 : i32
    return %c0_i32, %c0_i32_0, %c0_i32_1 : i32, i32, i32
  }
  func.func @transform_3(%arg0: i32, %arg1: i32) -> (i32, i32) {
    %c0_i32 = arith.constant 0 : i32
    %c0_i32_0 = arith.constant 0 : i32
    %c0_i32_1 = arith.constant 0 : i32
    return %c0_i32, %c0_i32_0 : i32, i32
  }
  func.func @transform_4(%arg0: i32, %arg1: i32) -> (i32, i32, i32) {
    %c0_i32 = arith.constant 0 : i32
    %c0_i32_0 = arith.constant 0 : i32
    %c0_i32_1 = arith.constant 0 : i32
    %c0_i32_2 = arith.constant 0 : i32
    return %c0_i32, %c0_i32_0, %c0_i32_1 : i32, i32, i32
  }
  func.func @transform_5(%arg0: i32, %arg1: i32) -> (i32, i32) {
    %c0_i32 = arith.constant 0 : i32
    %c0_i32_0 = arith.constant 0 : i32
    %c0_i32_1 = arith.constant 0 : i32
    return %c0_i32, %c0_i32_0 : i32, i32
  }
  func.func @transform_6(%arg0: i32, %arg1: i32) -> (i32, i32, i32) {
    %c0_i32 = arith.constant 0 : i32
    %c0_i32_0 = arith.constant 0 : i32
    %c0_i32_1 = arith.constant 0 : i32
    %c0_i32_2 = arith.constant 0 : i32
    return %c0_i32, %c0_i32_0, %c0_i32_1 : i32, i32, i32
  }
  func.func @transform_7(%arg0: i32, %arg1: i32) -> (i32, i32) {
    %c0_i32 = arith.constant 0 : i32
    %c0_i32_0 = arith.constant 0 : i32
    %c0_i32_1 = arith.constant 0 : i32
    return %c0_i32, %c0_i32_0 : i32, i32
  }
  func.func @transform_8(%arg0: i32, %arg1: i32) -> (i32, i32, i32) {
    %c0_i32 = arith.constant 0 : i32
    %c0_i32_0 = arith.constant 0 : i32
    %c0_i32_1 = arith.constant 0 : i32
    %c0_i32_2 = arith.constant 0 : i32
    return %c0_i32, %c0_i32_0, %c0_i32_1 : i32, i32, i32
  }
  func.func @transform_9(%arg0: i32, %arg1: i32) -> (i32, i32) {
    %c0_i32 = arith.constant 0 : i32
    %c0_i32_0 = arith.constant 0 : i32
    %c0_i32_1 = arith.constant 0 : i32
    return %c0_i32, %c0_i32_0 : i32, i32
  }
  func.func @transform_10(%arg0: i32, %arg1: i32) -> (i32, i32, i32) {
    %c0_i32 = arith.constant 0 : i32
    %c0_i32_0 = arith.constant 0 : i32
    %c0_i32_1 = arith.constant 0 : i32
    %c0_i32_2 = arith.constant 0 : i32
    return %c0_i32, %c0_i32_0, %c0_i32_1 : i32, i32, i32
  }
  func.func @transform_11(%arg0: i32, %arg1: i32) -> (i32, i32) {
    %c0_i32 = arith.constant 0 : i32
    %c0_i32_0 = arith.constant 0 : i32
    %c0_i32_1 = arith.constant 0 : i32
    return %c0_i32, %c0_i32_0 : i32, i32
  }
  func.func @transform_12(%arg0: i32, %arg1: i32) -> (i32, i32, i32) {
    %c0_i32 = arith.constant 0 : i32
    %c0_i32_0 = arith.constant 0 : i32
    return %arg0, %arg1, %c0_i32 : i32, i32, i32
  }
}

</mosaic_0001>

<bundles_post_ra>
// kernel: tpu_custom_call.1
= control target key start
LH: loop header
LB: loop body
LE: loop exit
PB: predicated region body
PF: predicated region fallthrough
CT: control target
= control target key end

     0   :  { %s6099_s21 = smov 0   ;;  %s6101_s22 = smov 0   ;;  %s6831_s0 = inlined_call_operand.vmem [shape: f32[2,384,5], index: 0, kind: input, shape index: {}]   ;;  %s6832_s1 = inlined_call_operand.vmem [shape: f32[2,384,5], index: 1, kind: input, shape index: {}]   ;;  %s6833_s2 = inlined_call_operand.vmem [shape: f32[2,5,32], index: 2, kind: input, shape index: {}]   ;;  %s6834_s3 = inlined_call_operand.vmem [shape: f32[2,32], index: 3, kind: input, shape index: {}]   ;;  %s6835_s4 = inlined_call_operand.vmem [shape: bf16[8,32,32], index: 4, kind: input, shape index: {}]   ;;  %s6836_s5 = inlined_call_operand.vmem [shape: f32[2,32], index: 5, kind: input, shape index: {}]   ;;  %s6837_s6 = inlined_call_operand.vmem [shape: bf16[4,32,32], index: 6, kind: input, shape index: {}]   ;;  %s6838_s7 = inlined_call_operand.vmem [shape: f32[2,32], index: 7, kind: input, shape index: {}]   ;;  %s6839_s8 = inlined_call_operand.vmem [shape: bf16[4,32,32], index: 8, kind: input, shape index: {}]   ;;  %s6840_s9 = inlined_call_operand.vmem [shape: f32[2,32], index: 9, kind: input, shape index: {}]   ;;  %s6841_s10 = inlined_call_operand.vmem [shape: bf16[4,32,32], index: 10, kind: input, shape index: {}]   ;;  %s6842_s11 = inlined_call_operand.vmem [shape: f32[2,32], index: 11, kind: input, shape index: {}]   ;;  %s6843_s12 = inlined_call_operand.vmem [shape: f32[2,10,32], index: 12, kind: output, shape index: {}]  }
   0x1   :  { %s6103_s23 = smov 0  }
   0x2 LB: > { %s34_s24 = sadd.s32 1, %s6026_s22  ;;  %p4842_p0 = scmp.ge.s32.totalorder %s6030_s23, 1  ;;  %s6030_s23 = sphi %s6103_s23, %s22_s23   ;;  %s6026_s22 = sphi %s6101_s22, %s6845_s22   ;;  %s6022_s21 = sphi %s6099_s21, %s6844_s21  }
   0x3   : > { %p36_p1 = scmp.ge.s32.totalorder %s34_s24, 2  ;;  %p416_p2 = scmp.lt.s32.totalorder %s6030_s23, 3 }
   0x5   : > { %s6847_s24 = smov (%p36_p1, %s34_s24), 0  ;;  %p417_p3 = pnand %p4842_p0, %p416_p2 }
   0x6   : > { %v4847_v0 = vld [vmem:[%s6833_s2 + $0x8] sm:$0x1f] (!%p417_p3)  ;;  %vm872_vm0 = vcmask (!%p417_p3), 1044480   ;;  %p486_p4 = scmp.lt.s32.totalorder (!%p417_p3), %s6022_s21, 1  ;;  %v6124_v1 = vld [vmem:[%s6833_s2] sm:$0x1f] (!%p417_p3) }
   0x7   : > { %420 = sbr.rel (%p417_p3) target bundleno = 1652 (0x674), region = 68  ;;  %5347 = vmatprep.subr.msk.mxu0 (!%p417_p3), %vm872_vm0, %v4847_v0  ;;  %5751 = vmatprep.subr.msk.mxu1 (!%p417_p3), %vm872_vm0, %v4847_v0  ;;  %vm564_vm1 = vcmask (!%p417_p3), 39936   ;;  %vm2173_vm2 = vcmask (!%p417_p3), 261120   ;;  %vm2221_vm3 = vcmask (!%p417_p3), 257024   ;;  %vm6033_vm6 = vmmov (!%p417_p3), 0  }
   0x8   : > { %5348 = vmatpush3.msk.msra.mxu0 (!%p417_p3), %vm872_vm0, %v4847_v0  ;;  %5752 = vmatpush3.msk.msra.mxu1 (!%p417_p3), %vm872_vm0, %v4847_v0  ;;  %vm3603_vm7 = vcmask (!%p417_p3), 259072   ;;  %vm4731_vm14 = vcmask (!%p417_p3), 254976  }
   0x9   : > { %5421 = vmatprep.subr.msk.mxu0 (!%p417_p3), %vm872_vm0, %v6124_v1 }
   0xe   : > { %s6849_s21 = smov (!%p486_p4, %s6022_s21), 1 }
   0xf   : > { %s5939_s29 = smul.u32 384, %s6849_s21  ;;  %s5136_s25 = sshll.u32 %s6849_s21, 4 }
  0x10   : > { %s521_s28 = scalar_lea.vmem %s6843_s12, %s5136_s25 }
  0x11   : > { %s6139_s14 = scalar_lea.vmem %s6831_s0, %s5939_s29  ;;  %s5135_s15 = sadd.s32 320, %s5939_s29 }
  0x12   : > { %v524_v2 = vld [vmem:[%s6139_s14] sm:$0xff]  ;;  %v525_v3 = vld [vmem:[%s6139_s14 + $0x8] sm:$0xff]  ;;  %v526_v4 = vld [vmem:[%s6139_s14 + $0x10] sm:$0xff]  ;;  %s6217_s18 = scalar_lea.vmem %s6832_s1, %s5135_s15 }
  0x13   : > { %565 = vst.msk [vmem:[#allocation2] sm:$0xff] %vm564_vm1, %v524_v2  ;;  %566 = vst.msk [vmem:[#allocation2 + $0x8] sm:$0xff] %vm564_vm1, %v525_v3  ;;  %v527_v5 = vld [vmem:[%s6139_s14 + $0x18] sm:$0xff]  ;;  %v528_v6 = vld [vmem:[%s6139_s14 + $0x20] sm:$0xff] }
  0x14   : > { %567 = vst.msk [vmem:[#allocation2 + $0x10] sm:$0xff] %vm564_vm1, %v526_v4  ;;  %v529_v7 = vld [vmem:[%s6139_s14 + $0x28] sm:$0xff]  ;;  %568 = vst.msk [vmem:[#allocation2 + $0x18] sm:$0xff] %vm564_vm1, %v527_v5  ;;  %v530_v8 = vld [vmem:[%s6139_s14 + $0x30] sm:$0xff] }
  0x15   : > { %569 = vst.msk [vmem:[#allocation2 + $0x20] sm:$0xff] %vm564_vm1, %v528_v6  ;;  %570 = vst.msk [vmem:[#allocation2 + $0x28] sm:$0xff] %vm564_vm1, %v529_v7  ;;  %v531_v9 = vld [vmem:[%s6139_s14 + $0x38] sm:$0xff]  ;;  %v532_v10 = vld [vmem:[%s6139_s14 + $0x40] sm:$0xff] }
  0x16   : > { %571 = vst.msk [vmem:[#allocation2 + $0x30] sm:$0xff] %vm564_vm1, %v530_v8  ;;  %572 = vst.msk [vmem:[#allocation2 + $0x38] sm:$0xff] %vm564_vm1, %v531_v9  ;;  %v533_v11 = vld [vmem:[%s6139_s14 + $0x48] sm:$0xff]  ;;  %v534_v12 = vld [vmem:[%s6139_s14 + $0x50] sm:$0xff] }
  0x17   : > { %573 = vst.msk [vmem:[#allocation2 + $0x40] sm:$0xff] %vm564_vm1, %v532_v10  ;;  %v535_v13 = vld [vmem:[%s6139_s14 + $0x58] sm:$0xff]  ;;  %574 = vst.msk [vmem:[#allocation2 + $0x48] sm:$0xff] %vm564_vm1, %v533_v11  ;;  %v536_v14 = vld [vmem:[%s6139_s14 + $0x60] sm:$0xff] }
  0x18   : > { %575 = vst.msk [vmem:[#allocation2 + $0x50] sm:$0xff] %vm564_vm1, %v534_v12  ;;  %576 = vst.msk [vmem:[#allocation2 + $0x58] sm:$0xff] %vm564_vm1, %v535_v13  ;;  %v537_v15 = vld [vmem:[%s6139_s14 + $0x68] sm:$0xff]  ;;  %v538_v16 = vld [vmem:[%s6139_s14 + $0x70] sm:$0xff] }
  0x19   : > { %577 = vst.msk [vmem:[#allocation2 + $0x60] sm:$0xff] %vm564_vm1, %v536_v14  ;;  %578 = vst.msk [vmem:[#allocation2 + $0x68] sm:$0xff] %vm564_vm1, %v537_v15  ;;  %v539_v17 = vld [vmem:[%s6139_s14 + $0x78] sm:$0xff]  ;;  %v540_v18 = vld [vmem:[%s6139_s14 + $0x80] sm:$0xff] }
  0x1a   : > { %579 = vst.msk [vmem:[#allocation2 + $0x70] sm:$0xff] %vm564_vm1, %v538_v16  ;;  %v541_v19 = vld [vmem:[%s6139_s14 + $0x88] sm:$0xff]  ;;  %580 = vst.msk [vmem:[#allocation2 + $0x78] sm:$0xff] %vm564_vm1, %v539_v17  ;;  %v542_v20 = vld [vmem:[%s6139_s14 + $0x90] sm:$0xff] }
  0x1b   : > { %581 = vst.msk [vmem:[#allocation2 + $0x80] sm:$0xff] %vm564_vm1, %v540_v18  ;;  %582 = vst.msk [vmem:[#allocation2 + $0x88] sm:$0xff] %vm564_vm1, %v541_v19  ;;  %v543_v21 = vld [vmem:[%s6139_s14 + $0x98] sm:$0xff]  ;;  %v544_v22 = vld [vmem:[%s6139_s14 + $0xa0] sm:$0xff] }
  0x1c   : > { %583 = vst.msk [vmem:[#allocation2 + $0x90] sm:$0xff] %vm564_vm1, %v542_v20  ;;  %584 = vst.msk [vmem:[#allocation2 + $0x98] sm:$0xff] %vm564_vm1, %v543_v21  ;;  %v545_v23 = vld [vmem:[%s6139_s14 + $0xa8] sm:$0xff]  ;;  %v546_v24 = vld [vmem:[%s6139_s14 + $0xb0] sm:$0xff] }
  0x1d   : > { %585 = vst.msk [vmem:[#allocation2 + $0xa0] sm:$0xff] %vm564_vm1, %v544_v22  ;;  %v547_v25 = vld [vmem:[%s6139_s14 + $0xb8] sm:$0xff]  ;;  %v678_v26 = vld [vmem:[#allocation2 + $0x1] sm:$0xff]  ;;  %v679_v27 = vld [vmem:[#allocation2 + $0x9] sm:$0xff] }
  0x1e   : > { %586 = vst.msk [vmem:[#allocation2 + $0xa8] sm:$0xff] %vm564_vm1, %v545_v23  ;;  %587 = vst.msk [vmem:[#allocation2 + $0xb0] sm:$0xff] %vm564_vm1, %v546_v24  ;;  %v548_v28 = vld [vmem:[%s6139_s14 + $0xc0] sm:$0xff]  ;;  %5349 = vmatprep.mubr.msk.f32.mxu0 %vm564_vm1, %v678_v26  ;;  %v680_v29 = vld [vmem:[#allocation2 + $0x11] sm:$0xff] }
  0x1f   : > { %588 = vst.msk [vmem:[#allocation2 + $0xb8] sm:$0xff] %vm564_vm1, %v547_v25  ;;  %589 = vst.msk [vmem:[#allocation2 + $0xc0] sm:$0xff] %vm564_vm1, %v548_v28  ;;  %5350 = vmatmul.mubr.msk.f32.vlgmr.msra.gmra.mrb[0].mxu0 %vm564_vm1, %v679_v27  ;;  %v681_v30 = vld [vmem:[#allocation2 + $0x19] sm:$0xff]  ;;  %v682_v31 = vld [vmem:[#allocation2 + $0x21] sm:$0xff] }
  0x20   : > { %5422 = vmatpush3.msk.msra.mxu0 %vm872_vm0, %v6124_v1  ;;  %5352 = vmatprep.mubr.msk.f32.mxu0 %vm564_vm1, %v680_v29  ;;  %v683_v32 = vld [vmem:[#allocation2 + $0x29] sm:$0xff]  ;;  %v684_v33 = vld [vmem:[#allocation2 + $0x31] sm:$0xff]  ;;  %v685_v36 = vld [vmem:[#allocation2 + $0x39] sm:$0xff] }
  0x21   : > { %v549_v34 = vld [vmem:[%s6139_s14 + $0xc8] sm:$0xff]  ;;  %v550_v35 = vld [vmem:[%s6139_s14 + $0xd0] sm:$0xff]  ;;  %v551_v37 = vld [vmem:[%s6139_s14 + $0xd8] sm:$0xff] }
  0x22   : > { %590 = vst.msk [vmem:[#allocation2 + $0xc8] sm:$0xff] %vm564_vm1, %v549_v34  ;;  %591 = vst.msk [vmem:[#allocation2 + $0xd0] sm:$0xff] %vm564_vm1, %v550_v35  ;;  %v552_v38 = vld [vmem:[%s6139_s14 + $0xe0] sm:$0xff]  ;;  %v553_v39 = vld [vmem:[%s6139_s14 + $0xe8] sm:$0xff] }
  0x23   : > { %5353 = vmatmul.mubr.msk.f32.gmra.mrb[2].mxu0 %vm564_vm1, %v681_v30  ;;  %v686_v40 = vld [vmem:[#allocation2 + $0x41] sm:$0xff]  ;;  %592 = vst.msk [vmem:[#allocation2 + $0xd8] sm:$0xff] %vm564_vm1, %v551_v37  ;;  %593 = vst.msk [vmem:[#allocation2 + $0xe0] sm:$0xff] %vm564_vm1, %v552_v38  ;;  %v554_v41 = vld [vmem:[%s6139_s14 + $0xf0] sm:$0xff] }
  0x24   : > { %5355 = vmatprep.mubr.msk.f32.mxu0 %vm564_vm1, %v682_v31  ;;  %594 = vst.msk [vmem:[#allocation2 + $0xe8] sm:$0xff] %vm564_vm1, %v553_v39  ;;  %v555_v42 = vld [vmem:[%s6139_s14 + $0xf8] sm:$0xff]  ;;  %v556_v43 = vld [vmem:[%s6139_s14 + $0x100] sm:$0xff]  ;;  %595 = vst.msk [vmem:[#allocation2 + $0xf0] sm:$0xff] %vm564_vm1, %v554_v41 }
  0x25   : > { %596 = vst.msk [vmem:[#allocation2 + $0xf8] sm:$0xff] %vm564_vm1, %v555_v42  ;;  %597 = vst.msk [vmem:[#allocation2 + $0x100] sm:$0xff] %vm564_vm1, %v556_v43  ;;  %v557_v44 = vld [vmem:[%s6139_s14 + $0x108] sm:$0xff]  ;;  %v558_v45 = vld [vmem:[%s6139_s14 + $0x110] sm:$0xff] }
  0x26   : > { %v559_v46 = vld [vmem:[%s6139_s14 + $0x118] sm:$0xff]  ;;  %598 = vst.msk [vmem:[#allocation2 + $0x108] sm:$0xff] %vm564_vm1, %v557_v44  ;;  %599 = vst.msk [vmem:[#allocation2 + $0x110] sm:$0xff] %vm564_vm1, %v558_v45  ;;  %v560_v47 = vld [vmem:[%s6139_s14 + $0x120] sm:$0xff] }
  0x27   : > { %5356 = vmatmul.mubr.msk.f32.gmra.mrb[4].mxu0 %vm564_vm1, %v683_v32  ;;  %600 = vst.msk [vmem:[#allocation2 + $0x118] sm:$0xff] %vm564_vm1, %v559_v46  ;;  %v561_v48 = vld [vmem:[%s6139_s14 + $0x128] sm:$0xff]  ;;  %v562_v49 = vld [vmem:[%s6139_s14 + $0x130] sm:$0xff]  ;;  %601 = vst.msk [vmem:[#allocation2 + $0x120] sm:$0xff] %vm564_vm1, %v560_v47 }
  0x28   : > { %5358 = vmatprep.mubr.msk.f32.mxu0 %vm564_vm1, %v684_v33  ;;  %602 = vst.msk [vmem:[#allocation2 + $0x128] sm:$0xff] %vm564_vm1, %v561_v48  ;;  %603 = vst.msk [vmem:[#allocation2 + $0x130] sm:$0xff] %vm564_vm1, %v562_v49  ;;  %v563_v50 = vld [vmem:[%s6139_s14 + $0x138] sm:$0xff]  ;;  %v605_v51 = vld [vmem:[%s6217_s18] sm:$0xff] }
  0x29   : > { %604 = vst.msk [vmem:[#allocation2 + $0x138] sm:$0xff] %vm564_vm1, %v563_v50  ;;  %613 = vst.msk [vmem:[#allocation2 + $0x140] sm:$0xff] %vm564_vm1, %v605_v51  ;;  %v687_v52 = vld [vmem:[#allocation2 + $0x49] sm:$0xff]  ;;  %v688_v53 = vld [vmem:[#allocation2 + $0x51] sm:$0xff] }
  0x2a   : > { %v689_v54 = vld [vmem:[#allocation2 + $0x59] sm:$0xff]  ;;  %v690_v55 = vld [vmem:[#allocation2 + $0x61] sm:$0xff]  ;;  %v691_v56 = vld [vmem:[#allocation2 + $0x69] sm:$0xff] }
  0x2b   : > { %5359 = vmatmul.mubr.msk.f32.gmra.mrb[6].mxu0 %vm564_vm1, %v685_v36  ;;  %v692_v57 = vld [vmem:[#allocation2 + $0x71] sm:$0xff]  ;;  %v693_v58 = vld [vmem:[#allocation2 + $0x79] sm:$0xff]  ;;  %v694_v59 = vld [vmem:[#allocation2 + $0x81] sm:$0xff] }
  0x2c   : > { %5361 = vmatprep.mubr.msk.f32.mxu0 %vm564_vm1, %v686_v40  ;;  %v695_v60 = vld [vmem:[#allocation2 + $0x89] sm:$0xff]  ;;  %v696_v61 = vld [vmem:[#allocation2 + $0x91] sm:$0xff]  ;;  %v697_v0 = vld [vmem:[#allocation2 + $0x99] sm:$0xff] }
  0x2d   : > { %v606_v62 = vld [vmem:[%s6217_s18 + $0x8] sm:$0xff]  ;;  %v607_v63 = vld [vmem:[%s6217_s18 + $0x10] sm:$0xff]  ;;  %v608_v1 = vld [vmem:[%s6217_s18 + $0x18] sm:$0xff] }
  0x2e   : > { %614 = vst.msk [vmem:[#allocation2 + $0x148] sm:$0xff] %vm564_vm1, %v606_v62  ;;  %615 = vst.msk [vmem:[#allocation2 + $0x150] sm:$0xff] %vm564_vm1, %v607_v63  ;;  %v609_v2 = vld [vmem:[%s6217_s18 + $0x20] sm:$0xff]  ;;  %v699_v4 = vld [vmem:[#allocation2 + $0xa9] sm:$0xff] }
  0x2f   : > { %5362 = vmatmul.mubr.msk.f32.gmra.mrb[8].mxu0 %vm564_vm1, %v687_v52  ;;  %v698_v3 = vld [vmem:[#allocation2 + $0xa1] sm:$0xff]  ;;  %616 = vst.msk [vmem:[#allocation2 + $0x158] sm:$0xff] %vm564_vm1, %v608_v1  ;;  %617 = vst.msk [vmem:[#allocation2 + $0x160] sm:$0xff] %vm564_vm1, %v609_v2  ;;  %v700_v5 = vld [vmem:[#allocation2 + $0xb1] sm:$0xff] }
  0x30   : > { %5364 = vmatprep.mubr.msk.f32.mxu0 %vm564_vm1, %v688_v53  ;;  %v701_v8 = vld [vmem:[#allocation2 + $0xb9] sm:$0xff]  ;;  %v702_v10 = vld [vmem:[#allocation2 + $0xc1] sm:$0xff]  ;;  %v703_v12 = vld [vmem:[#allocation2 + $0xc9] sm:$0xff] }
  0x31   : > { %v704_v13 = vld [vmem:[#allocation2 + $0xd1] sm:$0xff]  ;;  %v705_v14 = vld [vmem:[#allocation2 + $0xd9] sm:$0xff]  ;;  %v706_v15 = vld [vmem:[#allocation2 + $0xe1] sm:$0xff] }
  0x32   : > { %v707_v16 = vld [vmem:[#allocation2 + $0xe9] sm:$0xff]  ;;  %v708_v17 = vld [vmem:[#allocation2 + $0xf1] sm:$0xff]  ;;  %v709_v18 = vld [vmem:[#allocation2 + $0xf9] sm:$0xff] }
  0x33   : > { %5365 = vmatmul.mubr.msk.f32.gmra.mrb[10].mxu0 %vm564_vm1, %v689_v54  ;;  %v710_v19 = vld [vmem:[#allocation2 + $0x101] sm:$0xff]  ;;  %v711_v20 = vld [vmem:[#allocation2 + $0x109] sm:$0xff]  ;;  %v712_v21 = vld [vmem:[#allocation2 + $0x111] sm:$0xff] }
  0x34   : > { %5367 = vmatprep.mubr.msk.f32.mxu0 %vm564_vm1, %v690_v55  ;;  %v713_v22 = vld [vmem:[#allocation2 + $0x119] sm:$0xff]  ;;  %v714_v23 = vld [vmem:[#allocation2 + $0x121] sm:$0xff]  ;;  %v715_v24 = vld [vmem:[#allocation2 + $0x129] sm:$0xff] }
  0x35   : > { %v718_v6 = vld [vmem:[#allocation2 + $0x141] sm:$0xff]  ;;  %v719_v7 = vld [vmem:[#allocation2 + $0x149] sm:$0xff]  ;;  %v716_v25 = vld [vmem:[#allocation2 + $0x131] sm:$0xff] }
  0x36   : > { %5409 = vmatprep.mubr.msk.f32.mxu1 %vm564_vm1, %v718_v6  ;;  %v720_v9 = vld [vmem:[#allocation2 + $0x151] sm:$0xff]  ;;  %v721_v11 = vld [vmem:[#allocation2 + $0x159] sm:$0xff]  ;;  %v630_v28 = vld [vmem:[#allocation2 + $0x8] sm:$0xff] }
  0x37   : > { %5368 = vmatmul.mubr.msk.f32.gmra.mrb[12].mxu0 %vm564_vm1, %v691_v56  ;;  %5410 = vmatmul.mubr.msk.f32.vlgmr.msra.gmra.mrb[0].mxu1 %vm564_vm1, %v719_v7  ;;  %v717_v26 = vld [vmem:[#allocation2 + $0x139] sm:$0xff]  ;;  %v631_v29 = vld [vmem:[#allocation2 + $0x10] sm:$0xff]  ;;  %v634_v32 = vld [vmem:[#allocation2 + $0x28] sm:$0xff]  ;;  %v6032_v7 = vmov 0.0  }
  0x38   : > { %5370 = vmatprep.mubr.msk.f32.mxu0 %vm564_vm1, %v692_v57  ;;  %5412 = vmatprep.mubr.msk.f32.mxu1 %vm564_vm1, %v720_v9  ;;  %v629_v27 = vld [vmem:[#allocation2] sm:$0xff]  ;;  %v632_v30 = vld [vmem:[#allocation2 + $0x18] sm:$0xff]  ;;  %v635_v33 = vld [vmem:[#allocation2 + $0x30] sm:$0xff]  ;;  %2174 = vst.msk [vmem:[#allocation3] sm:$0xff] %vm2173_vm2, %v6032_v7 }
  0x39   : > { %v633_v31 = vld [vmem:[#allocation2 + $0x20] sm:$0xff]  ;;  %v636_v34 = vld [vmem:[#allocation2 + $0x38] sm:$0xff]  ;;  %v638_v36 = vld [vmem:[#allocation2 + $0x48] sm:$0xff]  ;;  %2175 = vst.msk [vmem:[#allocation3 + $0x8] sm:$0xff] %vm2173_vm2, %v6032_v7  ;;  %5623 = vmatprep.subr.bf16.mxu0 %v6032_v7 }
  0x3a   : > { %v637_v35 = vld [vmem:[#allocation2 + $0x40] sm:$0xff]  ;;  %v639_v37 = vld [vmem:[#allocation2 + $0x50] sm:$0xff]  ;;  %v640_v38 = vld [vmem:[#allocation2 + $0x58] sm:$0xff]  ;;  %2176 = vst.msk [vmem:[#allocation3 + $0x10] sm:$0xff] %vm2173_vm2, %v6032_v7 }
  0x3b   : > { %5371 = vmatmul.mubr.msk.f32.gmra.mrb[14].mxu0 %vm564_vm1, %v693_v58  ;;  %5413 = vmatmul.mubr.msk.f32.gmra.mrb[2].mxu1 %vm564_vm1, %v721_v11  ;;  %v641_v39 = vld [vmem:[#allocation2 + $0x60] sm:$0xff]  ;;  %v642_v40 = vld [vmem:[#allocation2 + $0x68] sm:$0xff]  ;;  %v643_v41 = vld [vmem:[#allocation2 + $0x70] sm:$0xff]  ;;  %2218 = vst.msk [vmem:[#allocation3 + $0x160] sm:$0xff] %vm2173_vm2, %v6032_v7 }
  0x3c   : > { %5373 = vmatprep.mubr.msk.f32.mxu0 %vm564_vm1, %v694_v59  ;;  %v644_v42 = vld [vmem:[#allocation2 + $0x78] sm:$0xff]  ;;  %v645_v43 = vld [vmem:[#allocation2 + $0x80] sm:$0xff]  ;;  %v646_v44 = vld [vmem:[#allocation2 + $0x88] sm:$0xff]  ;;  %2219 = vst.msk [vmem:[#allocation3 + $0x168] sm:$0xff] %vm2173_vm2, %v6032_v7 }
  0x3d   : > { %v647_v45 = vld [vmem:[#allocation2 + $0x90] sm:$0xff]  ;;  %v648_v46 = vld [vmem:[#allocation2 + $0x98] sm:$0xff]  ;;  %v649_v47 = vld [vmem:[#allocation2 + $0xa0] sm:$0xff]  ;;  %2220 = vst.msk [vmem:[#allocation3 + $0x170] sm:$0xff] %vm2173_vm2, %v6032_v7 }
  0x3e   : > { %v650_v48 = vld [vmem:[#allocation2 + $0xa8] sm:$0xff]  ;;  %v651_v49 = vld [vmem:[#allocation2 + $0xb0] sm:$0xff]  ;;  %v652_v50 = vld [vmem:[#allocation2 + $0xb8] sm:$0xff]  ;;  %2222 = vst.msk [vmem:[#allocation3 + $0x178] sm:$0xf] %vm2221_vm3, %v6032_v7 }
  0x3f   : > { %5374 = vmatmul.mubr.msk.f32.gmra.mrb[16].mxu0 %vm564_vm1, %v695_v60  ;;  %v653_v51 = vld [vmem:[#allocation2 + $0xc0] sm:$0xff]  ;;  %v654_v52 = vld [vmem:[#allocation2 + $0xc8] sm:$0xff]  ;;  %v655_v53 = vld [vmem:[#allocation2 + $0xd0] sm:$0xff]  ;;  %3604 = vst.msk [vmem:[#allocation4 + $0x58] sm:$0x3f] %vm3603_vm7, %v6032_v7 }
  0x40   : > { %5376 = vmatprep.mubr.msk.f32.mxu0 %vm564_vm1, %v696_v61  ;;  %v656_v54 = vld [vmem:[#allocation2 + $0xd8] sm:$0xff]  ;;  %v657_v55 = vld [vmem:[#allocation2 + $0xe0] sm:$0xff]  ;;  %v658_v56 = vld [vmem:[#allocation2 + $0xe8] sm:$0xff] }
  0x41   : > { %v659_v57 = vld [vmem:[#allocation2 + $0xf0] sm:$0xff]  ;;  %v660_v58 = vld [vmem:[#allocation2 + $0xf8] sm:$0xff]  ;;  %v661_v59 = vld [vmem:[#allocation2 + $0x100] sm:$0xff] }
  0x42   : > { %v662_v60 = vld [vmem:[#allocation2 + $0x108] sm:$0xff]  ;;  %v663_v61 = vld [vmem:[#allocation2 + $0x110] sm:$0xff]  ;;  %v664_v62 = vld [vmem:[#allocation2 + $0x118] sm:$0xff] }
  0x43   : > { %5377 = vmatmul.mubr.msk.f32.gmra.mrb[18].mxu0 %vm564_vm1, %v697_v0  ;;  %v665_v63 = vld [vmem:[#allocation2 + $0x120] sm:$0xff]  ;;  %v666_v0 = vld [vmem:[#allocation2 + $0x128] sm:$0xff]  ;;  %v667_v1 = vld [vmem:[#allocation2 + $0x130] sm:$0xff] }
  0x44   : > { %5379 = vmatprep.mubr.msk.f32.mxu0 %vm564_vm1, %v698_v3  ;;  %v668_v2 = vld [vmem:[#allocation2 + $0x138] sm:$0xff]  ;;  %v669_v3 = vld [vmem:[#allocation2 + $0x140] sm:$0xff]  ;;  %v611_v9 = vld [vmem:[%s6217_s18 + $0x30] sm:$0xff] }
  0x45   : > { %v672_v6 = vld [vmem:[#allocation2 + $0x158] sm:$0xff]  ;;  %619 = vst.msk [vmem:[#allocation2 + $0x170] sm:$0xff] %vm564_vm1, %v611_v9 }
  0x47   : > { %5380 = vmatmul.mubr.msk.f32.gmra.mrb[20].mxu0 %vm564_vm1, %v699_v4  ;;  %v670_v4 = vld [vmem:[#allocation2 + $0x148] sm:$0xff] }
  0x48   : > { %5382 = vmatprep.mubr.msk.f32.mxu0 %vm564_vm1, %v700_v5  ;;  %v671_v5 = vld [vmem:[#allocation2 + $0x150] sm:$0xff] }
  0x4b   : > { %5383 = vmatmul.mubr.msk.f32.gmra.mrb[22].mxu0 %vm564_vm1, %v701_v8  ;;  %v610_v8 = vld [vmem:[%s6217_s18 + $0x28] sm:$0xff] }
  0x4c   : > { %5385 = vmatprep.mubr.msk.f32.mxu0 %vm564_vm1, %v702_v10  ;;  %618 = vst.msk [vmem:[#allocation2 + $0x168] sm:$0xff] %vm564_vm1, %v610_v8  ;;  %v612_v10 = vld [vmem:[%s6217_s18 + $0x38] sm:$0xff] }
  0x4d   : > { %620 = vst.msk [vmem:[#allocation2 + $0x178] sm:$0xff] %vm564_vm1, %v612_v10 }
  0x4f   : > { %5386 = vmatmul.mubr.msk.f32.gmra.mrb[24].mxu0 %vm564_vm1, %v703_v12 }
  0x50   : > { %5388 = vmatprep.mubr.msk.f32.mxu0 %vm564_vm1, %v704_v13 }
  0x53   : > { %5389 = vmatmul.mubr.msk.f32.gmra.mrb[26].mxu0 %vm564_vm1, %v705_v14  ;;  %v722_v11 = vld [vmem:[#allocation2 + $0x161] sm:$0xff]  ;;  %v723_v12 = vld [vmem:[#allocation2 + $0x169] sm:$0xff] }
  0x54   : > { %5391 = vmatprep.mubr.msk.f32.mxu0 %vm564_vm1, %v706_v15  ;;  %5415 = vmatprep.mubr.msk.f32.mxu1 %vm564_vm1, %v722_v11  ;;  %v724_v13 = vld [vmem:[#allocation2 + $0x171] sm:$0xff]  ;;  %v725_v14 = vld [vmem:[#allocation2 + $0x179] sm:$0xf] }
  0x55   : > { %5416 = vmatmul.mubr.msk.f32.gmra.mrb[4].mxu1 %vm564_vm1, %v723_v12  ;;  %v5968_v15 = vld [vmem:[%s6835_s4 + $0x10] sm:$0xff]  }
  0x56   : > { %5418 = vmatprep.mubr.msk.f32.mxu1 %vm564_vm1, %v724_v13  ;;  %5495 = vmatprep.subr.bf16.mxu1 %v5968_v15 }
  0x57   : > { %5392 = vmatmul.mubr.msk.f32.gmra.mrb[28].mxu0 %vm564_vm1, %v707_v16  ;;  %5496 = vmatpush3.bf16.msra.mxu1 %v5968_v15  ;;  %v5969_v16 = vld [vmem:[%s6835_s4 + $0x18] sm:$0xff]  }
  0x58   : > { %5394 = vmatprep.mubr.msk.f32.mxu0 %vm564_vm1, %v708_v17  ;;  %5497 = vmatprep.subr.bf16.mxu1 %v5969_v16 }
  0x59   : > { %5419 = vmatmul.mubr.msk.f32.gmra.mrb[6].mxu1 %vm564_vm1, %v725_v14 }
  0x5b   : > { %5395 = vmatmul.mubr.msk.f32.gmra.mrb[30].mxu0 %vm564_vm1, %v709_v18  ;;  %5498 = vmatpush3.bf16.msra.mxu1 %v5969_v16 }
  0x5c   : > { %5397 = vmatprep.mubr.msk.f32.mxu0 %vm564_vm1, %v710_v19 }
  0x5f   : > { %5398 = vmatmul.mubr.msk.f32.gmra.mrb[32].mxu0 %vm564_vm1, %v711_v20 }
  0x60   : > { %5400 = vmatprep.mubr.msk.f32.mxu0 %vm564_vm1, %v712_v21 }
  0x63   : > { %5401 = vmatmul.mubr.msk.f32.gmra.mrb[34].mxu0 %vm564_vm1, %v713_v22 }
  0x64   : > { %5403 = vmatprep.mubr.msk.f32.mxu0 %vm564_vm1, %v714_v23  ;;  %v6368_v23 = vld [vmem:[%s6835_s4] sm:$0xff]  }
  0x65   : > { %5511 = vmatprep.subr.bf16.mxu1 %v6368_v23 }
  0x67   : > { %5404 = vmatmul.mubr.msk.f32.gmra.mrb[36].mxu0 %vm564_vm1, %v715_v24  ;;  %v1787_v24 = vlaneseq }
  0x68   : > { %5406 = vmatprep.mubr.msk.f32.mxu0 %vm564_vm1, %v716_v25 }
  0x69   : > { %v6372_v25 = vshrl.u32 %v1787_v24, 7 }
  0x6b   : > { %5407 = vmatmul.mubr.msk.f32.gmra.mrb[38].mxu0 %vm564_vm1, %v717_v26 }
  0x6c   : > { %5423 = vmatprep.mubr.msk.f32.mxu0 %vm564_vm1, %v629_v27  ;;  %v1791_v27 = vadd.s32 24, %v6372_v25 }
  0x6f   : > { %5424 = vmatmul.mubr.msk.f32.vlgmr.msra.gmra.mrb[40].mxu0 %vm564_vm1, %v630_v28 }
  0x70   : > { %5426 = vmatprep.mubr.msk.f32.mxu0 %vm564_vm1, %v631_v29  ;;  %v6378_v29 = vld [vmem:[%s6834_s3] ss:$0 sm:$0xff] }
  0x73   : > { %5427 = vmatmul.mubr.msk.f32.gmra.mrb[2].mxu0 %vm564_vm1, %v632_v30 }
  0x74   : > { %5429 = vmatprep.mubr.msk.f32.mxu0 %vm564_vm1, %v633_v31  ;;  %v6383_v31 = vld [vmem:[%s6834_s3 + $0x1] ss:$0 sm:$0xff] }
  0x77   : > { %5430 = vmatmul.mubr.msk.f32.gmra.mrb[4].mxu0 %vm564_vm1, %v634_v32  ;;  %v1840_v32 = vadd.s32 4294967266, %v1791_v27 }
  0x78   : > { %5432 = vmatprep.mubr.msk.f32.mxu0 %vm564_vm1, %v635_v33 }
  0x79   : > { %vm1888_vm4 = vcmp.ge.s32.totalorder %v1840_v32, 0 }
  0x7b   : > { %5433 = vmatmul.mubr.msk.f32.gmra.mrb[6].mxu0 %vm564_vm1, %v636_v34 }
  0x7c   : > { %5435 = vmatprep.mubr.msk.f32.mxu0 %vm564_vm1, %v637_v35 }
  0x7f   : > { %5436 = vmatmul.mubr.msk.f32.gmra.mrb[8].mxu0 %vm564_vm1, %v638_v36 }
  0x80   : > { %5438 = vmatprep.mubr.msk.f32.mxu0 %vm564_vm1, %v639_v37 }
  0x83   : > { %5439 = vmatmul.mubr.msk.f32.gmra.mrb[10].mxu0 %vm564_vm1, %v640_v38 }
  0x84   : > { %5441 = vmatprep.mubr.msk.f32.mxu0 %vm564_vm1, %v641_v39 }
  0x87   : > { %5442 = vmatmul.mubr.msk.f32.gmra.mrb[12].mxu0 %vm564_vm1, %v642_v40 }
  0x88   : > { %5444 = vmatprep.mubr.msk.f32.mxu0 %vm564_vm1, %v643_v41 }
  0x8b   : > { %5445 = vmatmul.mubr.msk.f32.gmra.mrb[14].mxu0 %vm564_vm1, %v644_v42 }
  0x8c   : > { %5447 = vmatprep.mubr.msk.f32.mxu0 %vm564_vm1, %v645_v43 }
  0x8f   : > { %5448 = vmatmul.mubr.msk.f32.gmra.mrb[16].mxu0 %vm564_vm1, %v646_v44 }
  0x90   : > { %5450 = vmatprep.mubr.msk.f32.mxu0 %vm564_vm1, %v647_v45 }
  0x93   : > { %5451 = vmatmul.mubr.msk.f32.gmra.mrb[18].mxu0 %vm564_vm1, %v648_v46 }
  0x94   : > { %5453 = vmatprep.mubr.msk.f32.mxu0 %vm564_vm1, %v649_v47 }
  0x97   : > { %5454 = vmatmul.mubr.msk.f32.gmra.mrb[20].mxu0 %vm564_vm1, %v650_v48 }
  0x98   : > { %5456 = vmatprep.mubr.msk.f32.mxu0 %vm564_vm1, %v651_v49 }
  0x9b   : > { %5457 = vmatmul.mubr.msk.f32.gmra.mrb[22].mxu0 %vm564_vm1, %v652_v50 }
  0x9c   : > { %5459 = vmatprep.mubr.msk.f32.mxu0 %vm564_vm1, %v653_v51 }
  0x9f   : > { %5460 = vmatmul.mubr.msk.f32.gmra.mrb[24].mxu0 %vm564_vm1, %v654_v52 }
  0xa0   : > { %5462 = vmatprep.mubr.msk.f32.mxu0 %vm564_vm1, %v655_v53 }
  0xa3   : > { %5463 = vmatmul.mubr.msk.f32.gmra.mrb[26].mxu0 %vm564_vm1, %v656_v54 }
  0xa4   : > { %5465 = vmatprep.mubr.msk.f32.mxu0 %vm564_vm1, %v657_v55 }
  0xa7   : > { %5466 = vmatmul.mubr.msk.f32.gmra.mrb[28].mxu0 %vm564_vm1, %v658_v56 }
  0xa8   : > { %5468 = vmatprep.mubr.msk.f32.mxu0 %vm564_vm1, %v659_v57 }
  0xab   : > { %5469 = vmatmul.mubr.msk.f32.gmra.mrb[30].mxu0 %vm564_vm1, %v660_v58 }
  0xac   : > { %5471 = vmatprep.mubr.msk.f32.mxu0 %vm564_vm1, %v661_v59 }
  0xaf   : > { %5472 = vmatmul.mubr.msk.f32.gmra.mrb[32].mxu0 %vm564_vm1, %v662_v60 }
  0xb0   : > { %5474 = vmatprep.mubr.msk.f32.mxu0 %vm564_vm1, %v663_v61 }
  0xb3   : > { %5475 = vmatmul.mubr.msk.f32.gmra.mrb[34].mxu0 %vm564_vm1, %v664_v62 }
  0xb4   : > { %5477 = vmatprep.mubr.msk.f32.mxu0 %vm564_vm1, %v665_v63 }
  0xb7   : > { %5478 = vmatmul.mubr.msk.f32.gmra.mrb[36].mxu0 %vm564_vm1, %v666_v0 }
  0xb8   : > { %5480 = vmatprep.mubr.msk.f32.mxu0 %vm564_vm1, %v667_v1 }
  0xbb   : > { %5481 = vmatmul.mubr.msk.f32.gmra.mrb[38].mxu0 %vm564_vm1, %v668_v2 }
  0xbc   : > { %5483 = vmatprep.mubr.msk.f32.mxu0 %vm564_vm1, %v669_v3 }
  0xbf   : > { %5484 = vmatmul.mubr.msk.f32.gmra.mrb[42].mxu0 %vm564_vm1, %v670_v4 }
  0xc0   : > { %5486 = vmatprep.mubr.msk.f32.mxu0 %vm564_vm1, %v671_v5 }
  0xc3   : > { %5487 = vmatmul.mubr.msk.f32.gmra.mrb[44].mxu0 %vm564_vm1, %v672_v6 }
  0xf2   : > { %v5351_v17 = vpop.f32.mrb[0].mxu0 }
  0xf3   : > { %v942_v18 = vpop.f32.mrb[1].mxu0 }
 0x10a   : > { %v6357_v19 = vpop.f32.mrb[0].mxu1 }
 0x10b   : > { %v6359_v20 = vpop.f32.mrb[1].mxu1 }
 0x10e   : > { %v6361_v21 = vpop.f32.mrb[2].mxu1 }
 0x10f   : > { %v6363_v22 = vpop.f32.mrb[3].mxu1 }
 0x142   : > { %v5425_v26 = vpop.f32.mrb[40].mxu0 }
 0x143   : > { %v1394_v28 = vpop.f32.mrb[41].mxu0 }
 0x146   : > { %v5428_v30 = vpop.f32.mrb[2].mxu0 }
 0x147   : > { %v1641_v33 = vmul.f32 %v5428_v30, %v6378_v29  ;;  %v1404_v34 = vpop.f32.mrb[3].mxu0 }
 0x149   : > { %v1694_v35 = vadd.f32 %v6383_v31, %v1641_v33 }
 0x14a   : > { %v5431_v36 = vpop.f32.mrb[4].mxu0 }
 0x14b   : > { %v1742_v37 = vmax.f32 %v1694_v35, 0.0  ;;  %v1643_v38 = vmul.f32 %v5431_v36, %v6378_v29  ;;  %v1414_v39 = vpop.f32.mrb[5].mxu0 }
 0x14c   : > { %v1642_v40 = vmul.f32 %v6378_v29, %v1414_v39 }
 0x14d   : > { %v2128_v41 = vsel %vm1888_vm4, %v1742_v37, 0.0  ;;  %v1696_v42 = vadd.f32 %v6383_v31, %v1643_v38 }
 0x14e   : > { %2177 = vst.msk [vmem:[#allocation3 + $0x18] sm:$0xff] %vm2173_vm2, %v2128_v41  ;;  %v1695_v43 = vadd.f32 %v6383_v31, %v1642_v40  ;;  %v5434_v44 = vpop.f32.mrb[6].mxu0 }
 0x14f   : > { %v1744_v45 = vmax.f32 %v1696_v42, 0.0  ;;  %v1645_v46 = vmul.f32 %v5434_v44, %v6378_v29  ;;  %v1424_v47 = vpop.f32.mrb[7].mxu0 }
 0x150   : > { %v1743_v48 = vmax.f32 %v1695_v43, 0.0  ;;  %v1644_v49 = vmul.f32 %v6378_v29, %v1424_v47 }
 0x151   : > { %2179 = vst.msk [vmem:[#allocation3 + $0x28] sm:$0xff] %vm2173_vm2, %v1744_v45  ;;  %v1698_v50 = vadd.f32 %v6383_v31, %v1645_v46 }
 0x152   : > { %2178 = vst.msk [vmem:[#allocation3 + $0x20] sm:$0xff] %vm2173_vm2, %v1743_v48  ;;  %v1697_v51 = vadd.f32 %v6383_v31, %v1644_v49  ;;  %v5437_v52 = vpop.f32.mrb[8].mxu0 }
 0x153   : > { %v1746_v53 = vmax.f32 %v1698_v50, 0.0  ;;  %v1647_v54 = vmul.f32 %v5437_v52, %v6378_v29  ;;  %v1434_v55 = vpop.f32.mrb[9].mxu0 }
 0x154   : > { %v1745_v56 = vmax.f32 %v1697_v51, 0.0  ;;  %v1646_v57 = vmul.f32 %v6378_v29, %v1434_v55 }
 0x155   : > { %2181 = vst.msk [vmem:[#allocation3 + $0x38] sm:$0xff] %vm2173_vm2, %v1746_v53  ;;  %v1700_v58 = vadd.f32 %v6383_v31, %v1647_v54  ;;  %v2257_v12 = vld [vmem:[#allocation3 + $0x1] ss:$4 sm:$0xff] }
 0x156   : > { %2180 = vst.msk [vmem:[#allocation3 + $0x30] sm:$0xff] %vm2173_vm2, %v1745_v56  ;;  %v1699_v59 = vadd.f32 %v6383_v31, %v1646_v57  ;;  %v5440_v60 = vpop.f32.mrb[10].mxu0 }
 0x157   : > { %v1748_v61 = vmax.f32 %v1700_v58, 0.0  ;;  %v1649_v62 = vmul.f32 %v5440_v60, %v6378_v29  ;;  %v1444_v63 = vpop.f32.mrb[11].mxu0  ;;  %v5971_v60 = vld [vmem:[%s6835_s4 + $0x8] sm:$0xff]  }
 0x158   : > { %v1747_v0 = vmax.f32 %v1699_v59, 0.0  ;;  %v1648_v1 = vmul.f32 %v6378_v29, %v1444_v63 }
 0x159   : > { %2183 = vst.msk [vmem:[#allocation3 + $0x48] sm:$0xff] %vm2173_vm2, %v1748_v61  ;;  %v1702_v2 = vadd.f32 %v6383_v31, %v1649_v62 }
 0x15a   : > { %2182 = vst.msk [vmem:[#allocation3 + $0x40] sm:$0xff] %vm2173_vm2, %v1747_v0  ;;  %v1701_v3 = vadd.f32 %v6383_v31, %v1648_v1  ;;  %v5443_v4 = vpop.f32.mrb[12].mxu0 }
 0x15b   : > { %v1750_v5 = vmax.f32 %v1702_v2, 0.0  ;;  %v1651_v6 = vmul.f32 %v5443_v4, %v6378_v29  ;;  %v1454_v8 = vpop.f32.mrb[13].mxu0 }
 0x15c   : > { %v1749_v9 = vmax.f32 %v1701_v3, 0.0  ;;  %v1650_v10 = vmul.f32 %v6378_v29, %v1454_v8 }
 0x15d   : > { %2185 = vst.msk [vmem:[#allocation3 + $0x58] sm:$0xff] %vm2173_vm2, %v1750_v5  ;;  %v1704_v11 = vadd.f32 %v6383_v31, %v1651_v6  ;;  %v2259_v13 = vld [vmem:[#allocation3 + $0x21] ss:$4 sm:$0xff] }
 0x15e   : > { %2184 = vst.msk [vmem:[#allocation3 + $0x50] sm:$0xff] %vm2173_vm2, %v1749_v9  ;;  %v1703_v14 = vadd.f32 %v6383_v31, %v1650_v10  ;;  %v5446_v15 = vpop.f32.mrb[14].mxu0  ;;  %v2280_v16 = vpack.c.bf16 %v2259_v13, %v2257_v12  ;;  %v6455_v5 = vld [vmem:[%s6835_s4 + $0x20] sm:$0xff]  }
 0x15f   : > { %v1752_v17 = vmax.f32 %v1704_v11, 0.0  ;;  %v1653_v18 = vmul.f32 %v5446_v15, %v6378_v29  ;;  %v1464_v24 = vpop.f32.mrb[15].mxu0 }
 0x160   : > { %v1751_v26 = vmax.f32 %v1703_v14, 0.0  ;;  %v1652_v27 = vmul.f32 %v6378_v29, %v1464_v24  ;;  %5499 = vmatprep.mubr.msk.bf16.mxu1 %vm2173_vm2, %v2280_v16 }
 0x161   : > { %2187 = vst.msk [vmem:[#allocation3 + $0x68] sm:$0xff] %vm2173_vm2, %v1752_v17  ;;  %v1706_v28 = vadd.f32 %v6383_v31, %v1653_v18 }
 0x162   : > { %2186 = vst.msk [vmem:[#allocation3 + $0x60] sm:$0xff] %vm2173_vm2, %v1751_v26  ;;  %v1705_v30 = vadd.f32 %v6383_v31, %v1652_v27  ;;  %v5449_v32 = vpop.f32.mrb[16].mxu0 }
 0x163   : > { %v1754_v33 = vmax.f32 %v1706_v28, 0.0  ;;  %v1655_v34 = vmul.f32 %v5449_v32, %v6378_v29  ;;  %v1474_v35 = vpop.f32.mrb[17].mxu0 }
 0x164   : > { %v1753_v36 = vmax.f32 %v1705_v30, 0.0  ;;  %v1654_v37 = vmul.f32 %v6378_v29, %v1474_v35 }
 0x165   : > { %2189 = vst.msk [vmem:[#allocation3 + $0x78] sm:$0xff] %vm2173_vm2, %v1754_v33  ;;  %v1708_v38 = vadd.f32 %v6383_v31, %v1655_v34  ;;  %v2261_v55 = vld [vmem:[#allocation3 + $0x41] ss:$4 sm:$0xff] }
 0x166   : > { %2188 = vst.msk [vmem:[#allocation3 + $0x70] sm:$0xff] %vm2173_vm2, %v1753_v36  ;;  %v1707_v39 = vadd.f32 %v6383_v31, %v1654_v37  ;;  %v5452_v40 = vpop.f32.mrb[18].mxu0 }
 0x167   : > { %v1756_v41 = vmax.f32 %v1708_v38, 0.0  ;;  %v1657_v42 = vmul.f32 %v5452_v40, %v6378_v29  ;;  %v1484_v43 = vpop.f32.mrb[19].mxu0 }
 0x168   : > { %v1755_v44 = vmax.f32 %v1707_v39, 0.0  ;;  %v1656_v45 = vmul.f32 %v6378_v29, %v1484_v43 }
 0x169   : > { %2191 = vst.msk [vmem:[#allocation3 + $0x88] sm:$0xff] %vm2173_vm2, %v1756_v41  ;;  %v1710_v46 = vadd.f32 %v6383_v31, %v1657_v42 }
 0x16a   : > { %2190 = vst.msk [vmem:[#allocation3 + $0x80] sm:$0xff] %vm2173_vm2, %v1755_v44  ;;  %v1709_v47 = vadd.f32 %v6383_v31, %v1656_v45  ;;  %v5455_v48 = vpop.f32.mrb[20].mxu0 }
 0x16b   : > { %v1758_v49 = vmax.f32 %v1710_v46, 0.0  ;;  %v1659_v50 = vmul.f32 %v5455_v48, %v6378_v29  ;;  %v1494_v51 = vpop.f32.mrb[21].mxu0 }
 0x16c   : > { %v1757_v52 = vmax.f32 %v1709_v47, 0.0  ;;  %v1658_v53 = vmul.f32 %v6378_v29, %v1494_v51 }
 0x16d   : > { %2193 = vst.msk [vmem:[#allocation3 + $0x98] sm:$0xff] %vm2173_vm2, %v1758_v49  ;;  %v1712_v54 = vadd.f32 %v6383_v31, %v1659_v50  ;;  %v2263_v56 = vld [vmem:[#allocation3 + $0x61] ss:$4 sm:$0xff] }
 0x16e   : > { %2192 = vst.msk [vmem:[#allocation3 + $0x90] sm:$0xff] %vm2173_vm2, %v1757_v52  ;;  %v1711_v57 = vadd.f32 %v6383_v31, %v1658_v53  ;;  %v5458_v58 = vpop.f32.mrb[22].mxu0  ;;  %v2281_v59 = vpack.c.bf16 %v2263_v56, %v2261_v55 }
 0x16f   : > { %v1760_v61 = vmax.f32 %v1712_v54, 0.0  ;;  %v1661_v62 = vmul.f32 %v5458_v58, %v6378_v29  ;;  %v1504_v63 = vpop.f32.mrb[23].mxu0 }
 0x170   : > { %v1759_v0 = vmax.f32 %v1711_v57, 0.0  ;;  %v1660_v1 = vmul.f32 %v6378_v29, %v1504_v63  ;;  %5500 = vmatmul.mubr.msk.bf16.vlgmr.msra.gmra.mrb[8].mxu1 %vm2173_vm2, %v2281_v59 }
 0x171   : > { %2195 = vst.msk [vmem:[#allocation3 + $0xa8] sm:$0xff] %vm2173_vm2, %v1760_v61  ;;  %v1714_v2 = vadd.f32 %v6383_v31, %v1661_v62  ;;  %5512 = vmatpush3.bf16.msra.mxu1 %v6368_v23 }
 0x172   : > { %2194 = vst.msk [vmem:[#allocation3 + $0xa0] sm:$0xff] %vm2173_vm2, %v1759_v0  ;;  %v1713_v3 = vadd.f32 %v6383_v31, %v1660_v1  ;;  %v5461_v4 = vpop.f32.mrb[24].mxu0  ;;  %5513 = vmatprep.subr.bf16.mxu1 %v5971_v60 }
 0x173   : > { %v1762_v6 = vmax.f32 %v1714_v2, 0.0  ;;  %v1663_v8 = vmul.f32 %v5461_v4, %v6378_v29  ;;  %v1514_v9 = vpop.f32.mrb[25].mxu0 }
 0x174   : > { %v1761_v10 = vmax.f32 %v1713_v3, 0.0  ;;  %v1662_v11 = vmul.f32 %v6378_v29, %v1514_v9 }
 0x175   : > { %2197 = vst.msk [vmem:[#allocation3 + $0xb8] sm:$0xff] %vm2173_vm2, %v1762_v6  ;;  %v1716_v23 = vadd.f32 %v6383_v31, %v1663_v8  ;;  %5514 = vmatpush3.bf16.msra.mxu1 %v5971_v60  ;;  %v2265_v36 = vld [vmem:[#allocation3 + $0x81] ss:$4 sm:$0xff] }
 0x176   : > { %2196 = vst.msk [vmem:[#allocation3 + $0xb0] sm:$0xff] %vm2173_vm2, %v1761_v10  ;;  %v1715_v12 = vadd.f32 %v6383_v31, %v1662_v11  ;;  %v5464_v13 = vpop.f32.mrb[26].mxu0  ;;  %5527 = vmatprep.subr.bf16.mxu1 %v6455_v5 }
 0x177   : > { %v1764_v14 = vmax.f32 %v1716_v23, 0.0  ;;  %v1665_v15 = vmul.f32 %v5464_v13, %v6378_v29  ;;  %v1524_v16 = vpop.f32.mrb[27].mxu0 }
 0x178   : > { %v1763_v17 = vmax.f32 %v1715_v12, 0.0  ;;  %v1664_v18 = vmul.f32 %v6378_v29, %v1524_v16 }
 0x179   : > { %2199 = vst.msk [vmem:[#allocation3 + $0xc8] sm:$0xff] %vm2173_vm2, %v1764_v14  ;;  %v1718_v24 = vadd.f32 %v6383_v31, %v1665_v15 }
 0x17a   : > { %2198 = vst.msk [vmem:[#allocation3 + $0xc0] sm:$0xff] %vm2173_vm2, %v1763_v17  ;;  %v1717_v26 = vadd.f32 %v6383_v31, %v1664_v18  ;;  %v5467_v27 = vpop.f32.mrb[28].mxu0 }
 0x17b   : > { %v1766_v28 = vmax.f32 %v1718_v24, 0.0  ;;  %v1667_v30 = vmul.f32 %v5467_v27, %v6378_v29  ;;  %v1534_v32 = vpop.f32.mrb[29].mxu0 }
 0x17c   : > { %v1765_v33 = vmax.f32 %v1717_v26, 0.0  ;;  %v1666_v34 = vmul.f32 %v6378_v29, %v1534_v32 }
 0x17d   : > { %2201 = vst.msk [vmem:[#allocation3 + $0xd8] sm:$0xff] %vm2173_vm2, %v1766_v28  ;;  %v1720_v35 = vadd.f32 %v6383_v31, %v1667_v30  ;;  %v2267_v37 = vld [vmem:[#allocation3 + $0xa1] ss:$4 sm:$0xff] }
 0x17e   : > { %2200 = vst.msk [vmem:[#allocation3 + $0xd0] sm:$0xff] %vm2173_vm2, %v1765_v33  ;;  %v1719_v38 = vadd.f32 %v6383_v31, %v1666_v34  ;;  %v5470_v39 = vpop.f32.mrb[30].mxu0  ;;  %v2282_v40 = vpack.c.bf16 %v2267_v37, %v2265_v36  ;;  %v1831_v34 = vadd.s32 344, %v6372_v25 }
 0x17f   : > { %v1768_v41 = vmax.f32 %v1720_v35, 0.0  ;;  %v1669_v42 = vmul.f32 %v5470_v39, %v6378_v29  ;;  %v1544_v43 = vpop.f32.mrb[31].mxu0 }
 0x180   : > { %v1767_v44 = vmax.f32 %v1719_v38, 0.0  ;;  %v1668_v45 = vmul.f32 %v6378_v29, %v1544_v43  ;;  %5503 = vmatprep.mubr.msk.bf16.mxu1 %vm2173_vm2, %v2282_v40 }
 0x181   : > { %2203 = vst.msk [vmem:[#allocation3 + $0xe8] sm:$0xff] %vm2173_vm2, %v1768_v41  ;;  %v1722_v46 = vadd.f32 %v6383_v31, %v1669_v42  ;;  %v1880_v41 = vadd.s32 4294967266, %v1831_v34 }
 0x182   : > { %2202 = vst.msk [vmem:[#allocation3 + $0xe0] sm:$0xff] %vm2173_vm2, %v1767_v44  ;;  %v1721_v47 = vadd.f32 %v6383_v31, %v1668_v45  ;;  %v5473_v48 = vpop.f32.mrb[32].mxu0 }
 0x183   : > { %v1770_v49 = vmax.f32 %v1722_v46, 0.0  ;;  %v1671_v50 = vmul.f32 %v5473_v48, %v6378_v29  ;;  %v1554_v51 = vpop.f32.mrb[33].mxu0  ;;  %vm1976_vm5 = vcmp.lt.s32.totalorder %v1880_v41, 320  ;;  %v2674_v41 = vld [vmem:[#allocation3 + $0x23] ss:$4 sm:$0xff] }
 0x184   : > { %v1769_v52 = vmax.f32 %v1721_v47, 0.0  ;;  %v1670_v53 = vmul.f32 %v6378_v29, %v1554_v51 }
 0x185   : > { %2205 = vst.msk [vmem:[#allocation3 + $0xf8] sm:$0xff] %vm2173_vm2, %v1770_v49  ;;  %v1724_v54 = vadd.f32 %v6383_v31, %v1671_v50  ;;  %v2269_v9 = vld [vmem:[#allocation3 + $0xc1] ss:$4 sm:$0xff]  ;;  %v2526_v34 = vld [vmem:[#allocation3 + $0xc2] ss:$4 sm:$0xff] }
 0x186   : > { %2204 = vst.msk [vmem:[#allocation3 + $0xf0] sm:$0xff] %vm2173_vm2, %v1769_v52  ;;  %v1723_v55 = vadd.f32 %v6383_v31, %v1670_v53  ;;  %v5476_v56 = vpop.f32.mrb[34].mxu0  ;;  %v2225_v52 = vld [vmem:[#allocation3 + $0x20] ss:$4 sm:$0xff] }
 0x187   : > { %v1772_v57 = vmax.f32 %v1724_v54, 0.0  ;;  %v1673_v58 = vmul.f32 %v5476_v56, %v6378_v29  ;;  %v1564_v59 = vpop.f32.mrb[35].mxu0 }
 0x188   : > { %v1771_v60 = vmax.f32 %v1723_v55, 0.0  ;;  %v1672_v61 = vmul.f32 %v6378_v29, %v1564_v59  ;;  %v2223_v55 = vld [vmem:[#allocation3] ss:$4 sm:$0xff] }
 0x189   : > { %2207 = vst.msk [vmem:[#allocation3 + $0x108] sm:$0xff] %vm2173_vm2, %v1772_v57  ;;  %v1726_v62 = vadd.f32 %v6383_v31, %v1673_v58  ;;  %v2246_v56 = vpack.c.bf16 %v2225_v52, %v2223_v55  ;;  %v2233_v57 = vld [vmem:[#allocation3 + $0xa0] ss:$4 sm:$0xff]  ;;  %v5417_v58 = vpop.f32.mrb[4].mxu1 }
 0x18a   : > { %2206 = vst.msk [vmem:[#allocation3 + $0x100] sm:$0xff] %vm2173_vm2, %v1771_v60  ;;  %v1725_v63 = vadd.f32 %v6383_v31, %v1672_v61  ;;  %v5479_v0 = vpop.f32.mrb[36].mxu0  ;;  %v2227_v59 = vld [vmem:[#allocation3 + $0x40] ss:$4 sm:$0xff]  ;;  %v1162_v60 = vpop.f32.mrb[5].mxu1 }
 0x18b   : > { %v1774_v1 = vmax.f32 %v1726_v62, 0.0  ;;  %v1675_v2 = vmul.f32 %v5479_v0, %v6378_v29  ;;  %v1574_v3 = vpop.f32.mrb[37].mxu0  ;;  %v2231_v62 = vld [vmem:[#allocation3 + $0x80] ss:$4 sm:$0xff] }
 0x18c   : > { %v1773_v4 = vmax.f32 %v1725_v63, 0.0  ;;  %v1674_v6 = vmul.f32 %v6378_v29, %v1574_v3  ;;  %v5973_v63 = vld [vmem:[%s6835_s4 + $0x28] sm:$0xff]   ;;  %v2248_v0 = vpack.c.bf16 %v2233_v57, %v2231_v62  ;;  %v5974_v3 = vld [vmem:[%s6835_s4 + $0x30] sm:$0xff]  }
 0x18d   : > { %2209 = vst.msk [vmem:[#allocation3 + $0x118] sm:$0xff] %vm2173_vm2, %v1774_v1  ;;  %v1728_v8 = vadd.f32 %v6383_v31, %v1675_v2  ;;  %v2271_v10 = vld [vmem:[#allocation3 + $0xe1] ss:$4 sm:$0xff]  ;;  %v5420_v1 = vpop.f32.mrb[6].mxu1  ;;  %v2830_v58 = vld [vmem:[#allocation3 + $0x4] ss:$4 sm:$0xff] }
 0x18e   : > { %2208 = vst.msk [vmem:[#allocation3 + $0x110] sm:$0xff] %vm2173_vm2, %v1773_v4  ;;  %v1727_v11 = vadd.f32 %v6383_v31, %v1674_v6  ;;  %v5482_v23 = vpop.f32.mrb[38].mxu0  ;;  %v2283_v12 = vpack.c.bf16 %v2271_v10, %v2269_v9  ;;  %v1172_v2 = vpop.f32.mrb[7].mxu1  ;;  %v2237_v4 = vld [vmem:[#allocation3 + $0xe0] ss:$4 sm:$0xff] }
 0x18f   : > { %v1776_v13 = vmax.f32 %v1728_v8, 0.0  ;;  %v1677_v14 = vmul.f32 %v5482_v23, %v6378_v29  ;;  %v1584_v15 = vpop.f32.mrb[39].mxu0  ;;  %v2235_v8 = vld [vmem:[#allocation3 + $0xc0] ss:$4 sm:$0xff] }
 0x190   : > { %v1775_v16 = vmax.f32 %v1727_v11, 0.0  ;;  %v1676_v17 = vmul.f32 %v6378_v29, %v1584_v15  ;;  %5504 = vmatmul.mubr.msk.bf16.gmra.mrb[12].mxu1 %vm2173_vm2, %v2283_v12  ;;  %v2249_v9 = vpack.c.bf16 %v2237_v4, %v2235_v8  ;;  %v2245_v23 = vld [vmem:[#allocation3 + $0x160] ss:$4 sm:$0x3f]  ;;  %v2516_v12 = vld [vmem:[#allocation3 + $0x22] ss:$4 sm:$0xff] }
 0x191   : > { %2211 = vst.msk [vmem:[#allocation3 + $0x128] sm:$0xff] %vm2173_vm2, %v1776_v13  ;;  %v1730_v18 = vadd.f32 %v6383_v31, %v1677_v14  ;;  %v2514_v14 = vld [vmem:[#allocation3 + $0x2] ss:$4 sm:$0xff]  ;;  %v2836_v60 = vld [vmem:[#allocation3 + $0x64] ss:$4 sm:$0xff] }
 0x192   : > { %2210 = vst.msk [vmem:[#allocation3 + $0x120] sm:$0xff] %vm2173_vm2, %v1775_v16  ;;  %v1729_v24 = vadd.f32 %v6383_v31, %v1676_v17  ;;  %v5485_v26 = vpop.f32.mrb[42].mxu0  ;;  %v2537_v15 = vpack.c.bf16 %v2516_v12, %v2514_v14  ;;  %v2520_v16 = vld [vmem:[#allocation3 + $0x62] ss:$4 sm:$0xff]  ;;  %v2834_v62 = vld [vmem:[#allocation3 + $0x44] ss:$4 sm:$0xff] }
 0x193   : > { %v1778_v27 = vmax.f32 %v1730_v18, 0.0  ;;  %v1600_v28 = vadd.f32 %v5485_v26, %v6357_v19  ;;  %v1594_v30 = vpop.f32.mrb[43].mxu0  ;;  %v2524_v17 = vld [vmem:[#allocation3 + $0xa2] ss:$4 sm:$0xff]  ;;  %v2844_v4 = vld [vmem:[#allocation3 + $0xe4] ss:$4 sm:$0xff] }
 0x194   : > { %v1777_v32 = vmax.f32 %v1729_v24, 0.0  ;;  %v1595_v33 = vadd.f32 %v1594_v30, %v6359_v20  ;;  %v2518_v18 = vld [vmem:[#allocation3 + $0x42] ss:$4 sm:$0xff]  ;;  %v2842_v8 = vld [vmem:[#allocation3 + $0xc4] ss:$4 sm:$0xff] }
 0x195   : > { %2213 = vst.msk [vmem:[#allocation3 + $0x138] sm:$0xff] %vm2173_vm2, %v1778_v27  ;;  %v1679_v35 = vmul.f32 %v6378_v29, %v1600_v28  ;;  %v2273_v48 = vld [vmem:[#allocation3 + $0x101] ss:$4 sm:$0xff]  ;;  %v2239_v10 = vld [vmem:[#allocation3 + $0x100] ss:$4 sm:$0xff]  ;;  %v2538_v24 = vpack.c.bf16 %v2520_v16, %v2518_v18 }
 0x196   : > { %2212 = vst.msk [vmem:[#allocation3 + $0x130] sm:$0xff] %vm2173_vm2, %v1777_v32  ;;  %v1678_v36 = vmul.f32 %v6378_v29, %v1595_v33  ;;  %v5488_v37 = vpop.f32.mrb[44].mxu0  ;;  %v2522_v26 = vld [vmem:[#allocation3 + $0x82] ss:$4 sm:$0xff]  ;;  %v2990_v12 = vld [vmem:[#allocation3 + $0x25] ss:$4 sm:$0xff] }
 0x197   : > { %v1732_v38 = vadd.f32 %v6383_v31, %v1679_v35  ;;  %v1610_v39 = vadd.f32 %v5488_v37, %v6361_v21  ;;  %v1604_v19 = vpop.f32.mrb[45].mxu0  ;;  %v5975_v27 = vld [vmem:[%s6835_s4 + $0x38] sm:$0xff]   ;;  %v2539_v28 = vpack.c.bf16 %v2524_v17, %v2522_v26  ;;  %v5976_v30 = vld [vmem:[%s6835_s4 + $0x40] sm:$0xff]  }
 0x198   : > { %v1731_v40 = vadd.f32 %v6383_v31, %v1678_v36  ;;  %v1605_v20 = vadd.f32 %v1604_v19, %v6363_v22  ;;  %v2528_v32 = vld [vmem:[#allocation3 + $0xe2] ss:$4 sm:$0xff]  ;;  %v2988_v14 = vld [vmem:[#allocation3 + $0x5] ss:$4 sm:$0xff] }
 0x199   : > { %v1780_v42 = vmax.f32 %v1732_v38, 0.0  ;;  %v1681_v43 = vmul.f32 %v6378_v29, %v1610_v39  ;;  %v2540_v35 = vpack.c.bf16 %v2528_v32, %v2526_v34  ;;  %v2530_v36 = vld [vmem:[#allocation3 + $0x102] ss:$4 sm:$0xff]  ;;  %v2994_v16 = vld [vmem:[#allocation3 + $0x65] ss:$4 sm:$0xff] }
 0x19a   : > { %v1779_v44 = vmax.f32 %v1731_v40, 0.0  ;;  %v1680_v45 = vmul.f32 %v6378_v29, %v1605_v20  ;;  %v2279_v29 = vld [vmem:[#allocation3 + $0x161] ss:$4 sm:$0x3f]  ;;  %v5985_v39 = vld [vmem:[%s6837_s6 + $0x18] sm:$0xff]  }
 0x19b   : > { %2215 = vst.msk [vmem:[#allocation3 + $0x148] sm:$0xff] %vm2173_vm2, %v1780_v42  ;;  %v1734_v46 = vadd.f32 %v6383_v31, %v1681_v43  ;;  %v5984_v38 = vld [vmem:[%s6837_s6 + $0x10] sm:$0xff]   ;;  %v5979_v1 = vld [vmem:[%s6835_s4 + $0x58] sm:$0xff]  }
 0x19c   : > { %2214 = vst.msk [vmem:[#allocation3 + $0x140] sm:$0xff] %vm2173_vm2, %v1779_v44  ;;  %v1733_v21 = vadd.f32 %v6383_v31, %v1680_v45  ;;  %v2229_v31 = vld [vmem:[#allocation3 + $0x60] ss:$4 sm:$0xff]  ;;  %5624 = vmatpush3.bf16.msra.mxu0 %v5984_v38  ;;  %v2536_v40 = vld [vmem:[#allocation3 + $0x162] ss:$4 sm:$0x3f] }
 0x19d   : > { %v1782_v47 = vmax.f32 %v1734_v46, 0.0  ;;  %v2275_v49 = vld [vmem:[#allocation3 + $0x121] ss:$4 sm:$0xff]  ;;  %v2247_v61 = vpack.c.bf16 %v2229_v31, %v2227_v59  ;;  %v2241_v6 = vld [vmem:[#allocation3 + $0x120] ss:$4 sm:$0xff]  ;;  %5625 = vmatprep.subr.bf16.mxu0 %v6032_v7 }
 0x19e   : > { %v1781_v50 = vmax.f32 %v1733_v21, 0.0  ;;  %v2284_v22 = vpack.c.bf16 %v2275_v49, %v2273_v48  ;;  %v2250_v11 = vpack.c.bf16 %v2241_v6, %v2239_v10  ;;  %v2532_v33 = vld [vmem:[#allocation3 + $0x122] ss:$4 sm:$0xff]  ;;  %v2672_v42 = vld [vmem:[#allocation3 + $0x3] ss:$4 sm:$0xff] }
 0x19f   : > { %v2168_v51 = vsel %vm1976_vm5, %v1782_v47, 0.0  ;;  %v2541_v37 = vpack.c.bf16 %v2532_v33, %v2530_v36  ;;  %v2695_v43 = vpack.c.bf16 %v2674_v41, %v2672_v42  ;;  %v2678_v44 = vld [vmem:[#allocation3 + $0x63] ss:$4 sm:$0xff]  ;;  %v2832_v31 = vld [vmem:[#allocation3 + $0x24] ss:$4 sm:$0xff] }
 0x1a0   : > { %2217 = vst.msk [vmem:[#allocation3 + $0x158] sm:$0xff] %vm2173_vm2, %v2168_v51  ;;  %2216 = vst.msk [vmem:[#allocation3 + $0x150] sm:$0xff] %vm2173_vm2, %v1781_v50  ;;  %5507 = vmatprep.mubr.msk.bf16.mxu1 %vm2173_vm2, %v2284_v22  ;;  %5626 = vmatpush3.bf16.msra.mxu0 %v5985_v39  ;;  %v2682_v45 = vld [vmem:[#allocation3 + $0xa3] ss:$4 sm:$0xff]  ;;  %v2853_v59 = vpack.c.bf16 %v2832_v31, %v2830_v58  ;;  %v2846_v10 = vld [vmem:[#allocation3 + $0x104] ss:$4 sm:$0xff] }
 0x1a1   : > { %5639 = vmatprep.subr.bf16.mxu0 %v6032_v7  ;;  %v2676_v46 = vld [vmem:[#allocation3 + $0x43] ss:$4 sm:$0xff]  ;;  %v2998_v17 = vld [vmem:[#allocation3 + $0xa5] ss:$4 sm:$0xff]  ;;  %v3146_v41 = vld [vmem:[#allocation3 + $0x6] ss:$4 sm:$0xff] }
 0x1a2   : > { %v2696_v21 = vpack.c.bf16 %v2678_v44, %v2676_v46  ;;  %v2680_v47 = vld [vmem:[#allocation3 + $0x83] ss:$4 sm:$0xff]  ;;  %v2992_v18 = vld [vmem:[#allocation3 + $0x45] ss:$4 sm:$0xff]  ;;  %v3152_v42 = vld [vmem:[#allocation3 + $0x66] ss:$4 sm:$0xff] }
 0x1a3   : > { %v5977_v48 = vld [vmem:[%s6835_s4 + $0x48] sm:$0xff]   ;;  %v2697_v49 = vpack.c.bf16 %v2682_v45, %v2680_v47  ;;  %v5978_v50 = vld [vmem:[%s6835_s4 + $0x50] sm:$0xff]  }
 0x1a4   : > { %v2686_v22 = vld [vmem:[#allocation3 + $0xe3] ss:$4 sm:$0xff]  ;;  %v2848_v6 = vld [vmem:[#allocation3 + $0x124] ss:$4 sm:$0xff]  ;;  %v2996_v26 = vld [vmem:[#allocation3 + $0x85] ss:$4 sm:$0xff] }
 0x1a5   : > { %v2690_v51 = vld [vmem:[#allocation3 + $0x123] ss:$4 sm:$0xff]  ;;  %v3002_v32 = vld [vmem:[#allocation3 + $0xe5] ss:$4 sm:$0xff]  ;;  %v3150_v44 = vld [vmem:[#allocation3 + $0x46] ss:$4 sm:$0xff] }
 0x1a6   : > { %v3006_v33 = vld [vmem:[#allocation3 + $0x125] ss:$4 sm:$0xff]  ;;  %v3170_v45 = vpack.c.bf16 %v3152_v42, %v3150_v44  ;;  %v3154_v46 = vld [vmem:[#allocation3 + $0x86] ss:$4 sm:$0xff]  ;;  %v3314_v58 = vld [vmem:[#allocation3 + $0xa7] ss:$4 sm:$0xff] }
 0x1a7   : > { %v2277_v53 = vld [vmem:[#allocation3 + $0x141] ss:$4 sm:$0xff]  ;;  %v2534_v19 = vld [vmem:[#allocation3 + $0x142] ss:$4 sm:$0xff]  ;;  %v2692_v55 = vld [vmem:[#allocation3 + $0x143] ss:$4 sm:$0xff] }
 0x1a8   : > { %v2285_v54 = vpack.c.bf16 %v2279_v29, %v2277_v53  ;;  %v2542_v20 = vpack.c.bf16 %v2536_v40, %v2534_v19  ;;  %v2684_v29 = vld [vmem:[#allocation3 + $0xc3] ss:$4 sm:$0xff]  ;;  %v3000_v34 = vld [vmem:[#allocation3 + $0xc5] ss:$4 sm:$0xff]  ;;  %v3148_v19 = vld [vmem:[#allocation3 + $0x26] ss:$4 sm:$0xff] }
 0x1a9   : > { %v2698_v52 = vpack.c.bf16 %v2686_v22, %v2684_v29  ;;  %v2688_v53 = vld [vmem:[#allocation3 + $0x103] ss:$4 sm:$0xff]  ;;  %v3004_v36 = vld [vmem:[#allocation3 + $0x105] ss:$4 sm:$0xff] }
 0x1aa   : > { %5508 = vmatmul.mubr.msk.bf16.gmra.mrb[16].mxu1 %vm2173_vm2, %v2285_v54  ;;  %v2699_v54 = vpack.c.bf16 %v2690_v51, %v2688_v53  ;;  %v3008_v38 = vld [vmem:[#allocation3 + $0x145] ss:$4 sm:$0xff]  ;;  %v3162_v51 = vld [vmem:[#allocation3 + $0x106] ss:$4 sm:$0xff] }
 0x1ab   : > { %5515 = vmatprep.mubr.msk.bf16.mxu1 %vm2173_vm2, %v2246_v56  ;;  %v2694_v56 = vld [vmem:[#allocation3 + $0x163] ss:$4 sm:$0x3f]  ;;  %v3010_v39 = vld [vmem:[#allocation3 + $0x165] ss:$4 sm:$0x3f] }
 0x1ac   : > { %v2700_v57 = vpack.c.bf16 %v2694_v56, %v2692_v55  ;;  %v3016_v40 = vpack.c.bf16 %v3010_v39, %v3008_v38  ;;  %v3168_v53 = vld [vmem:[#allocation3 + $0x166] ss:$4 sm:$0x3f]  ;;  %v3304_v56 = vld [vmem:[#allocation3 + $0x7] ss:$4 sm:$0xff] }
 0x1b2   : > { %5516 = vmatmul.mubr.msk.bf16.vlgmr.msra.gmra.mrb[8].mxu1 %vm2173_vm2, %v2247_v61  ;;  %v2840_v61 = vld [vmem:[#allocation3 + $0xa4] ss:$4 sm:$0xff] }
 0x1b3   : > { %5528 = vmatpush3.bf16.msra.mxu1 %v6455_v5  ;;  %5519 = vmatprep.mubr.msk.bf16.mxu1 %vm2173_vm2, %v2248_v0  ;;  %v2243_v5 = vld [vmem:[#allocation3 + $0x140] ss:$4 sm:$0xff] }
 0x1b4   : > { %5529 = vmatprep.subr.bf16.mxu1 %v5973_v63  ;;  %v2251_v13 = vpack.c.bf16 %v2245_v23, %v2243_v5  ;;  %v2838_v0 = vld [vmem:[#allocation3 + $0x84] ss:$4 sm:$0xff] }
 0x1b5   : > { %v2855_v2 = vpack.c.bf16 %v2840_v61, %v2838_v0  ;;  %v2850_v5 = vld [vmem:[#allocation3 + $0x144] ss:$4 sm:$0xff]  ;;  %v3312_v61 = vld [vmem:[#allocation3 + $0x87] ss:$4 sm:$0xff] }
 0x1b6   : > { %v2852_v23 = vld [vmem:[#allocation3 + $0x164] ss:$4 sm:$0x3f]  ;;  %v3322_v0 = vld [vmem:[#allocation3 + $0x127] ss:$4 sm:$0xff] }
 0x1b7   : > { %5530 = vmatpush3.bf16.msra.mxu1 %v5973_v63  ;;  %v2854_v63 = vpack.c.bf16 %v2836_v60, %v2834_v62  ;;  %v3329_v62 = vpack.c.bf16 %v3314_v58, %v3312_v61 }
 0x1b8   : > { %5543 = vmatprep.subr.bf16.mxu1 %v5974_v3 }
 0x1ba   : > { %5520 = vmatmul.mubr.msk.bf16.gmra.mrb[12].mxu1 %vm2173_vm2, %v2249_v9  ;;  %v2856_v9 = vpack.c.bf16 %v2844_v4, %v2842_v8  ;;  %v3326_v8 = vld [vmem:[#allocation3 + $0x167] ss:$4 sm:$0x3f] }
 0x1bb   : > { %5523 = vmatprep.mubr.msk.bf16.mxu1 %vm2173_vm2, %v2250_v11  ;;  %v2857_v11 = vpack.c.bf16 %v2848_v6, %v2846_v10  ;;  %v3324_v6 = vld [vmem:[#allocation3 + $0x147] ss:$4 sm:$0xff] }
 0x1bc   : > { %v673_v10 = vld [vmem:[#allocation2 + $0x160] sm:$0xff] }
 0x1bd   : > { %5489 = vmatprep.mubr.msk.f32.mxu0 %vm564_vm1, %v673_v10 }
 0x1c2   : > { %5524 = vmatmul.mubr.msk.bf16.gmra.mrb[16].mxu1 %vm2173_vm2, %v2251_v13  ;;  %v2858_v13 = vpack.c.bf16 %v2852_v23, %v2850_v5  ;;  %v675_v5 = vld [vmem:[#allocation2 + $0x170] sm:$0xff]  ;;  %v676_v23 = vld [vmem:[#allocation2 + $0x178] sm:$0xf] }
 0x1c3   : > { %5531 = vmatprep.mubr.msk.bf16.mxu1 %vm2173_vm2, %v2537_v15  ;;  %v3011_v15 = vpack.c.bf16 %v2990_v12, %v2988_v14  ;;  %v5040_v12 = vld [vmem:[%s6836_s5] ss:$0 sm:$0xff]  ;;  %v6627_v14 = vld [vmem:[%s6836_s5 + $0x1] ss:$0 sm:$0xff] }
 0x1ca   : > { %5532 = vmatmul.mubr.msk.bf16.vlgmr.msra.gmra.mrb[8].mxu1 %vm2173_vm2, %v2538_v24  ;;  %v3012_v24 = vpack.c.bf16 %v2994_v16, %v2992_v18 }
 0x1cb   : > { %5544 = vmatpush3.bf16.msra.mxu1 %v5974_v3  ;;  %5535 = vmatprep.mubr.msk.bf16.mxu1 %vm2173_vm2, %v2539_v28  ;;  %v5980_v3 = vld [vmem:[%s6835_s4 + $0x60] sm:$0xff]   ;;  %v3013_v28 = vpack.c.bf16 %v2998_v17, %v2996_v26  ;;  %v3508_v17 = vadd.s32 4294967289, %v6372_v25 }
 0x1cc   : > { %5545 = vmatprep.subr.bf16.mxu1 %v5975_v27 }
 0x1cd   : > { %vm3520_vm8 = vcmp.ge.s32.totalorder %v3508_v17, 0  ;;  %v5989_v17 = vld [vmem:[%s6837_s6 + $0x28] sm:$0xff]  }
 0x1cf   : > { %5546 = vmatpush3.bf16.msra.mxu1 %v5975_v27  ;;  %v5981_v27 = vld [vmem:[%s6835_s4 + $0x68] sm:$0xff]  }
 0x1d0   : > { %5559 = vmatprep.subr.bf16.mxu1 %v5976_v30 }
 0x1d2   : > { %5536 = vmatmul.mubr.msk.bf16.gmra.mrb[12].mxu1 %vm2173_vm2, %v2540_v35  ;;  %v3014_v35 = vpack.c.bf16 %v3002_v32, %v3000_v34 }
 0x1d3   : > { %5539 = vmatprep.mubr.msk.bf16.mxu1 %vm2173_vm2, %v2541_v37  ;;  %v3015_v37 = vpack.c.bf16 %v3006_v33, %v3004_v36 }
 0x1da   : > { %5540 = vmatmul.mubr.msk.bf16.gmra.mrb[16].mxu1 %vm2173_vm2, %v2542_v20  ;;  %v3169_v20 = vpack.c.bf16 %v3148_v19, %v3146_v41 }
 0x1db   : > { %5547 = vmatprep.mubr.msk.bf16.mxu1 %vm2173_vm2, %v2695_v43  ;;  %v3156_v43 = vld [vmem:[#allocation3 + $0xa6] ss:$4 sm:$0xff] }
 0x1dc   : > { %v3171_v47 = vpack.c.bf16 %v3156_v43, %v3154_v46 }
 0x1e2   : > { %5548 = vmatmul.mubr.msk.bf16.vlgmr.msra.gmra.mrb[8].mxu1 %vm2173_vm2, %v2696_v21  ;;  %v5983_v21 = vld [vmem:[%s6835_s4 + $0x78] sm:$0xff]  }
 0x1e3   : > { %5560 = vmatpush3.bf16.msra.mxu1 %v5976_v30  ;;  %5551 = vmatprep.mubr.msk.bf16.mxu1 %vm2173_vm2, %v2697_v49  ;;  %v5982_v30 = vld [vmem:[%s6835_s4 + $0x70] sm:$0xff]  }
 0x1e4   : > { %5561 = vmatprep.subr.bf16.mxu1 %v5977_v48  ;;  %v3164_v49 = vld [vmem:[#allocation3 + $0x126] ss:$4 sm:$0xff] }
 0x1e5   : > { %v3173_v29 = vpack.c.bf16 %v3164_v49, %v3162_v51 }
 0x1e7   : > { %5562 = vmatpush3.bf16.msra.mxu1 %v5977_v48  ;;  %v3160_v48 = vld [vmem:[#allocation3 + $0xe6] ss:$4 sm:$0xff] }
 0x1e8   : > { %5575 = vmatprep.subr.bf16.mxu1 %v5978_v50 }
 0x1ea   : > { %5552 = vmatmul.mubr.msk.bf16.gmra.mrb[12].mxu1 %vm2173_vm2, %v2698_v52  ;;  %v3166_v52 = vld [vmem:[#allocation3 + $0x146] ss:$4 sm:$0xff] }
 0x1eb   : > { %5555 = vmatprep.mubr.msk.bf16.mxu1 %vm2173_vm2, %v2699_v54  ;;  %v3306_v54 = vld [vmem:[#allocation3 + $0x27] ss:$4 sm:$0xff]  ;;  %v3174_v55 = vpack.c.bf16 %v3168_v53, %v3166_v52 }
 0x1ec   : > { %v3327_v31 = vpack.c.bf16 %v3306_v54, %v3304_v56 }
 0x1f2   : > { %5556 = vmatmul.mubr.msk.bf16.gmra.mrb[16].mxu1 %vm2173_vm2, %v2700_v57  ;;  %v3310_v57 = vld [vmem:[#allocation3 + $0x67] ss:$4 sm:$0xff] }
 0x1f3   : > { %5563 = vmatprep.mubr.msk.bf16.mxu1 %vm2173_vm2, %v2853_v59  ;;  %v3308_v59 = vld [vmem:[#allocation3 + $0x47] ss:$4 sm:$0xff] }
 0x1f4   : > { %v3328_v60 = vpack.c.bf16 %v3310_v57, %v3308_v59  ;;  %v5986_v57 = vld [vmem:[%s6837_s6] sm:$0xff]  }
 0x1fa   : > { %5564 = vmatmul.mubr.msk.bf16.vlgmr.msra.gmra.mrb[8].mxu1 %vm2173_vm2, %v2854_v63  ;;  %v3318_v63 = vld [vmem:[#allocation3 + $0xe7] ss:$4 sm:$0xff] }
 0x1fb   : > { %5576 = vmatpush3.bf16.msra.mxu1 %v5978_v50  ;;  %5567 = vmatprep.mubr.msk.bf16.mxu1 %vm2173_vm2, %v2855_v2  ;;  %v3158_v50 = vld [vmem:[#allocation3 + $0xc6] ss:$4 sm:$0xff] }
 0x1fc   : > { %5577 = vmatprep.subr.bf16.mxu1 %v5979_v1  ;;  %v3172_v22 = vpack.c.bf16 %v3160_v48, %v3158_v50 }
 0x1ff   : > { %5578 = vmatpush3.bf16.msra.mxu1 %v5979_v1  ;;  %v3316_v1 = vld [vmem:[#allocation3 + $0xc7] ss:$4 sm:$0xff] }
 0x200   : > { %5591 = vmatprep.subr.bf16.mxu1 %v5980_v3  ;;  %v3330_v2 = vpack.c.bf16 %v3318_v63, %v3316_v1 }
 0x202   : > { %5568 = vmatmul.mubr.msk.bf16.gmra.mrb[12].mxu1 %vm2173_vm2, %v2856_v9  ;;  %v3332_v9 = vpack.c.bf16 %v3326_v8, %v3324_v6 }
 0x203   : > { %5571 = vmatprep.mubr.msk.bf16.mxu1 %vm2173_vm2, %v2857_v11  ;;  %v674_v11 = vld [vmem:[#allocation2 + $0x168] sm:$0xff] }
 0x204   : > { %5490 = vmatmul.mubr.msk.f32.gmra.mrb[46].mxu0 %vm564_vm1, %v674_v11 }
 0x205   : > { %5492 = vmatprep.mubr.msk.f32.mxu0 %vm564_vm1, %v675_v5 }
 0x208   : > { %5493 = vmatmul.mubr.msk.f32.gmra.mrb[48].mxu0 %vm564_vm1, %v676_v23 }
 0x209   : > { %5627 = vmatprep.mubr.msk.bf16.mxu0 %vm6033_vm6, %v6032_v7 }
 0x20a   : > { %5572 = vmatmul.mubr.msk.bf16.gmra.mrb[16].mxu1 %vm2173_vm2, %v2858_v13 }
 0x20b   : > { %5579 = vmatprep.mubr.msk.bf16.mxu1 %vm2173_vm2, %v3011_v15 }
 0x212   : > { %5580 = vmatmul.mubr.msk.bf16.vlgmr.msra.gmra.mrb[8].mxu1 %vm2173_vm2, %v3012_v24 }
 0x213   : > { %5592 = vmatpush3.bf16.msra.mxu1 %v5980_v3  ;;  %5583 = vmatprep.mubr.msk.bf16.mxu1 %vm2173_vm2, %v3013_v28  ;;  %v3320_v3 = vld [vmem:[#allocation3 + $0x107] ss:$4 sm:$0xff] }
 0x214   : > { %5593 = vmatprep.subr.bf16.mxu1 %v5981_v27  ;;  %v3331_v4 = vpack.c.bf16 %v3322_v0, %v3320_v3 }
 0x217   : > { %5594 = vmatpush3.bf16.msra.mxu1 %v5981_v27 }
 0x218   : > { %5607 = vmatprep.subr.bf16.mxu1 %v5982_v30 }
 0x21a   : > { %5584 = vmatmul.mubr.msk.bf16.gmra.mrb[12].mxu1 %vm2173_vm2, %v3014_v35 }
 0x21b   : > { %5587 = vmatprep.mubr.msk.bf16.mxu1 %vm2173_vm2, %v3015_v37 }
 0x222   : > { %5588 = vmatmul.mubr.msk.bf16.gmra.mrb[16].mxu1 %vm2173_vm2, %v3016_v40 }
 0x223   : > { %5595 = vmatprep.mubr.msk.bf16.mxu1 %vm2173_vm2, %v3169_v20 }
 0x22a   : > { %5596 = vmatmul.mubr.msk.bf16.vlgmr.msra.gmra.mrb[8].mxu1 %vm2173_vm2, %v3170_v45 }
 0x22b   : > { %5608 = vmatpush3.bf16.msra.mxu1 %v5982_v30  ;;  %5599 = vmatprep.mubr.msk.bf16.mxu1 %vm2173_vm2, %v3171_v47  ;;  %v1798_v47 = vadd.s32 80, %v6372_v25 }
 0x22c   : > { %5609 = vmatprep.subr.bf16.mxu1 %v5983_v21 }
 0x22d   : > { %v3518_v53 = vadd.s32 4294967289, %v1798_v47 }
 0x22f   : > { %5610 = vmatpush3.bf16.msra.mxu1 %v5983_v21  ;;  %vm3542_vm9 = vcmp.lt.s32.totalorder %v3518_v53, 80  ;;  %v5994_v53 = vld [vmem:[%s6839_s8] sm:$0xff]  }
 0x232   : > { %5600 = vmatmul.mubr.msk.bf16.gmra.mrb[12].mxu1 %vm2173_vm2, %v3172_v22 }
 0x233   : > { %5603 = vmatprep.mubr.msk.bf16.mxu1 %vm2173_vm2, %v3173_v29 }
 0x23a   : > { %5604 = vmatmul.mubr.msk.bf16.gmra.mrb[16].mxu1 %vm2173_vm2, %v3174_v55 }
 0x23b   : > { %5611 = vmatprep.mubr.msk.bf16.mxu1 %vm2173_vm2, %v3327_v31 }
 0x242   : > { %5612 = vmatmul.mubr.msk.bf16.vlgmr.msra.gmra.mrb[8].mxu1 %vm2173_vm2, %v3328_v60 }
 0x243   : > { %5615 = vmatprep.mubr.msk.bf16.mxu1 %vm2173_vm2, %v3329_v62 }
 0x24a   : > { %5616 = vmatmul.mubr.msk.bf16.gmra.mrb[12].mxu1 %vm2173_vm2, %v3330_v2  ;;  %v5987_v2 = vld [vmem:[%s6837_s6 + $0x8] sm:$0xff]  }
 0x24b   : > { %5619 = vmatprep.mubr.msk.bf16.mxu1 %vm2173_vm2, %v3331_v4 }
 0x252   : > { %5620 = vmatmul.mubr.msk.bf16.gmra.mrb[16].mxu1 %vm2173_vm2, %v3332_v9 }
 0x315   : > { %v5613_v13 = vpop.f32.mrb[8].mxu1 }
 0x316   : > { %v3468_v15 = vmul.f32 %v5613_v13, %v5040_v12  ;;  %v3402_v16 = vpop.f32.mrb[9].mxu1 }
 0x317   : > { %v3466_v18 = vmul.f32 %v5040_v12, %v3402_v16  ;;  %v5614_v24 = vpop.f32.mrb[10].mxu1 }
 0x318   : > { %v3485_v26 = vadd.f32 %v6627_v14, %v3468_v15  ;;  %v3469_v27 = vmul.f32 %v5614_v24, %v5040_v12  ;;  %v3405_v28 = vpop.f32.mrb[11].mxu1  ;;  %v5988_v15 = vld [vmem:[%s6837_s6 + $0x20] sm:$0xff]  }
 0x319   : > { %v3483_v30 = vadd.f32 %v6627_v14, %v3466_v18  ;;  %v3467_v32 = vmul.f32 %v5040_v12, %v3405_v28 }
 0x31a   : > { %v3497_v33 = vmax.f32 %v3485_v26, 0.0  ;;  %v3486_v34 = vadd.f32 %v6627_v14, %v3469_v27 }
 0x31b   : > { %v3495_v35 = vmax.f32 %v3483_v30, 0.0  ;;  %v3484_v36 = vadd.f32 %v6627_v14, %v3467_v32 }
 0x31c   : > { %3594 = vst.msk [vmem:[#allocation4 + $0x10] sm:$0xff] %vm2173_vm2, %v3497_v33  ;;  %v3498_v37 = vmax.f32 %v3486_v34, 0.0  ;;  %v5990_v34 = vld [vmem:[%s6837_s6 + $0x30] sm:$0xff]  }
 0x31d   : > { %v3580_v38 = vsel %vm3520_vm8, %v3495_v35, 0.0  ;;  %v3496_v39 = vmax.f32 %v3484_v36, 0.0  ;;  %v5617_v19 = vpop.f32.mrb[12].mxu1  ;;  %v5991_v36 = vld [vmem:[%s6837_s6 + $0x38] sm:$0xff]  }
 0x31e   : > { %3592 = vst.msk [vmem:[#allocation4] sm:$0xff] %vm2173_vm2, %v3580_v38  ;;  %3595 = vst.msk [vmem:[#allocation4 + $0x18] sm:$0xff] %vm2173_vm2, %v3498_v37  ;;  %v3472_v40 = vmul.f32 %v5617_v19, %v5040_v12  ;;  %v3418_v41 = vpop.f32.mrb[13].mxu1 }
 0x31f   : > { %3593 = vst.msk [vmem:[#allocation4 + $0x8] sm:$0xff] %vm2173_vm2, %v3496_v39  ;;  %v3470_v20 = vmul.f32 %v5040_v12, %v3418_v41  ;;  %v5618_v42 = vpop.f32.mrb[14].mxu1 }
 0x320   : > { %v3489_v43 = vadd.f32 %v6627_v14, %v3472_v40  ;;  %v3473_v44 = vmul.f32 %v5618_v42, %v5040_v12  ;;  %v3421_v45 = vpop.f32.mrb[15].mxu1 }
 0x321   : > { %v3487_v46 = vadd.f32 %v6627_v14, %v3470_v20  ;;  %v3471_v21 = vmul.f32 %v5040_v12, %v3421_v45  ;;  %v5491_v45 = vpop.f32.mrb[46].mxu0 }
 0x322   : > { %v3501_v48 = vmax.f32 %v3489_v43, 0.0  ;;  %v3490_v49 = vadd.f32 %v6627_v14, %v3473_v44 }
 0x323   : > { %v3499_v50 = vmax.f32 %v3487_v46, 0.0  ;;  %v3488_v22 = vadd.f32 %v6627_v14, %v3471_v21  ;;  %v1614_v21 = vpop.f32.mrb[47].mxu0 }
 0x324   : > { %3598 = vst.msk [vmem:[#allocation4 + $0x30] sm:$0xff] %vm2173_vm2, %v3501_v48  ;;  %v3502_v51 = vmax.f32 %v3490_v49, 0.0  ;;  %v5494_v48 = vpop.f32.mrb[48].mxu0 }
 0x325   : > { %3596 = vst.msk [vmem:[#allocation4 + $0x20] sm:$0xff] %vm2173_vm2, %v3499_v50  ;;  %v3500_v29 = vmax.f32 %v3488_v22, 0.0  ;;  %v5621_v52 = vpop.f32.mrb[16].mxu1  ;;  %v3626_v54 = vld [vmem:[#allocation4 + $0x11] ss:$2 sm:$0xff]  ;;  %v1624_v49 = vpop.f32.mrb[49].mxu0 }
 0x326   : > { %3599 = vst.msk [vmem:[#allocation4 + $0x38] sm:$0xff] %vm2173_vm2, %v3502_v51  ;;  %v3476_v55 = vmul.f32 %v5621_v52, %v5040_v12  ;;  %v3434_v56 = vpop.f32.mrb[17].mxu1  ;;  %v3624_v31 = vld [vmem:[#allocation4 + $0x1] ss:$2 sm:$0xff]  ;;  %v3605_v13 = vld [vmem:[#allocation4] ss:$2 sm:$0xff] }
 0x327   : > { %3597 = vst.msk [vmem:[#allocation4 + $0x28] sm:$0xff] %vm2173_vm2, %v3500_v29  ;;  %v3474_v58 = vmul.f32 %v5040_v12, %v3434_v56  ;;  %v5622_v59 = vpop.f32.mrb[18].mxu1  ;;  %v3635_v60 = vpack.c.bf16 %v3626_v54, %v3624_v31  ;;  %v3800_v33 = vld [vmem:[#allocation4 + $0x2] ss:$2 sm:$0xff]  ;;  %v3904_v42 = vld [vmem:[#allocation4 + $0x3] ss:$2 sm:$0xff] }
 0x328   : > { %v3493_v61 = vadd.f32 %v6627_v14, %v3476_v55  ;;  %v3437_v62 = vpop.f32.mrb[19].mxu1  ;;  %v5992_v29 = vld [vmem:[%s6839_s8 + $0x10] sm:$0xff]   ;;  %v5993_v52 = vld [vmem:[%s6839_s8 + $0x18] sm:$0xff]   ;;  %v5074_v54 = vld [vmem:[%s6838_s7] ss:$0 sm:$0xff]  ;;  %v4036_v31 = vadd.s32 4294967293, %v6372_v25 }
 0x329   : > { %v3491_v63 = vadd.f32 %v6627_v14, %v3474_v58  ;;  %v3475_v0 = vmul.f32 %v5040_v12, %v3437_v62  ;;  %5628 = vmatmul.mubr.msk.bf16.vlgmr.msra.gmra.mrb[52].mxu0 %vm2173_vm2, %v3635_v60  ;;  %5687 = vmatprep.subr.bf16.mxu1 %v5992_v29  ;;  %v5075_v56 = vld [vmem:[%s6838_s7 + $0x1] ss:$0 sm:$0xff] }
 0x32a   : > { %v3505_v1 = vmax.f32 %v3493_v61, 0.0  ;;  %5640 = vmatpush3.bf16.msra.mxu0 %v5986_v57  ;;  %5631 = vmatprep.mubr.msk.bf16.mxu0 %vm6033_vm6, %v6032_v7  ;;  %vm4042_vm10 = vcmp.ge.s32.totalorder %v4036_v31, 0  ;;  %v5104_v31 = vld [vmem:[%s6840_s9] ss:$0 sm:$0xff] }
 0x32b   : > { %v3503_v3 = vmax.f32 %v3491_v63, 0.0  ;;  %v3492_v4 = vadd.f32 %v6627_v14, %v3475_v0  ;;  %5641 = vmatprep.subr.bf16.mxu0 %v6032_v7  ;;  %v3607_v14 = vld [vmem:[#allocation4 + $0x10] ss:$2 sm:$0xff]  ;;  %5688 = vmatpush3.bf16.msra.mxu1 %v5992_v29 }
 0x32c   : > { %v3590_v6 = vsel %vm3542_vm9, %v3505_v1, 0.0  ;;  %v3616_v16 = vpack.c.bf16 %v3607_v14, %v3605_v13  ;;  %v3802_v32 = vld [vmem:[#allocation4 + $0x12] ss:$2 sm:$0xff]  ;;  %v3906_v20 = vld [vmem:[#allocation4 + $0x13] ss:$2 sm:$0xff]  ;;  %5689 = vmatprep.subr.bf16.mxu1 %v5993_v52 }
 0x32d   : > { %3602 = vst.msk [vmem:[#allocation4 + $0x50] sm:$0xff] %vm2173_vm2, %v3590_v6  ;;  %3600 = vst.msk [vmem:[#allocation4 + $0x40] sm:$0xff] %vm2173_vm2, %v3503_v3  ;;  %v3504_v8 = vmax.f32 %v3492_v4, 0.0  ;;  %v3630_v9 = vld [vmem:[#allocation4 + $0x31] ss:$2 sm:$0xff]  ;;  %v3811_v35 = vpack.c.bf16 %v3802_v32, %v3800_v33  ;;  %v3915_v43 = vpack.c.bf16 %v3906_v20, %v3904_v42  ;;  %v5996_v20 = vld [vmem:[%s6839_s8 + $0x20] sm:$0xff]  }
 0x32e   : > { %v3628_v10 = vld [vmem:[#allocation4 + $0x21] ss:$2 sm:$0xff]  ;;  %5642 = vmatpush3.bf16.msra.mxu0 %v5987_v2  ;;  %v3609_v18 = vld [vmem:[#allocation4 + $0x20] ss:$2 sm:$0xff]  ;;  %v3611_v24 = vld [vmem:[#allocation4 + $0x30] ss:$2 sm:$0xff] }
 0x32f   : > { %3601 = vst.msk [vmem:[#allocation4 + $0x48] sm:$0xff] %vm2173_vm2, %v3504_v8  ;;  %v3636_v11 = vpack.c.bf16 %v3630_v9, %v3628_v10  ;;  %5655 = vmatprep.subr.bf16.mxu0 %v6032_v7  ;;  %v3617_v26 = vpack.c.bf16 %v3611_v24, %v3609_v18  ;;  %v3804_v38 = vld [vmem:[#allocation4 + $0x22] ss:$2 sm:$0xff]  ;;  %v3908_v46 = vld [vmem:[#allocation4 + $0x23] ss:$2 sm:$0xff]  ;;  %5690 = vmatpush3.bf16.msra.mxu1 %v5993_v52 }
 0x330   : > { %5695 = vmatprep.subr.bf16.mxu1 %v5994_v53 }
 0x331   : > { %5632 = vmatmul.mubr.msk.bf16.gmra.mrb[56].mxu0 %vm2173_vm2, %v3636_v11 }
 0x332   : > { %5635 = vmatprep.mubr.msk.bf16.mxu0 %vm6033_vm6, %v6032_v7 }
 0x334   : > { %v3634_v23 = vld [vmem:[#allocation4 + $0x51] ss:$2 sm:$0x3f]  ;;  %v3615_v28 = vld [vmem:[#allocation4 + $0x50] ss:$2 sm:$0x3f] }
 0x335   : > { %v3806_v37 = vld [vmem:[#allocation4 + $0x32] ss:$2 sm:$0xff]  ;;  %v3910_v44 = vld [vmem:[#allocation4 + $0x33] ss:$2 sm:$0xff] }
 0x336   : > { %v3632_v5 = vld [vmem:[#allocation4 + $0x41] ss:$2 sm:$0xff]  ;;  %v3613_v27 = vld [vmem:[#allocation4 + $0x40] ss:$2 sm:$0xff]  ;;  %v3812_v39 = vpack.c.bf16 %v3806_v37, %v3804_v38  ;;  %v3916_v47 = vpack.c.bf16 %v3910_v44, %v3908_v46 }
 0x337   : > { %v3637_v12 = vpack.c.bf16 %v3634_v23, %v3632_v5  ;;  %v3618_v30 = vpack.c.bf16 %v3615_v28, %v3613_v27  ;;  %v3808_v19 = vld [vmem:[#allocation4 + $0x42] ss:$2 sm:$0xff]  ;;  %v3810_v40 = vld [vmem:[#allocation4 + $0x52] ss:$2 sm:$0x3f] }
 0x338   : > { %v3813_v41 = vpack.c.bf16 %v3810_v40, %v3808_v19  ;;  %v3912_v50 = vld [vmem:[#allocation4 + $0x43] ss:$2 sm:$0xff]  ;;  %v3914_v22 = vld [vmem:[#allocation4 + $0x53] ss:$2 sm:$0x3f] }
 0x339   : > { %5636 = vmatmul.mubr.msk.bf16.gmra.mrb[60].mxu0 %vm2173_vm2, %v3637_v12  ;;  %v3917_v51 = vpack.c.bf16 %v3914_v22, %v3912_v50  ;;  %v1793_v12 = vadd.s32 40, %v6372_v25  ;;  %v5995_v40 = vld [vmem:[%s6839_s8 + $0x8] sm:$0xff]  }
 0x33a   : > { %5643 = vmatprep.mubr.msk.bf16.mxu0 %vm6033_vm6, %v6032_v7  ;;  %v5997_v46 = vld [vmem:[%s6839_s8 + $0x28] sm:$0xff]  }
 0x33b   : > { %v4041_v18 = vadd.s32 4294967293, %v1793_v12  ;;  %v6002_v12 = vld [vmem:[%s6841_s10] sm:$0xff]  }
 0x33d   : > { %vm4053_vm11 = vcmp.lt.s32.totalorder %v4041_v18, 40 }
 0x341   : > { %5644 = vmatmul.mubr.msk.bf16.vlgmr.msra.gmra.mrb[52].mxu0 %vm2173_vm2, %v3616_v16 }
 0x342   : > { %5656 = vmatpush3.bf16.msra.mxu0 %v5988_v15  ;;  %5647 = vmatprep.mubr.msk.bf16.mxu0 %vm6033_vm6, %v6032_v7 }
 0x343   : > { %5657 = vmatprep.subr.bf16.mxu0 %v6032_v7 }
 0x346   : > { %5658 = vmatpush3.bf16.msra.mxu0 %v5989_v17 }
 0x347   : > { %5671 = vmatprep.subr.bf16.mxu0 %v6032_v7 }
 0x349   : > { %5648 = vmatmul.mubr.msk.bf16.gmra.mrb[56].mxu0 %vm2173_vm2, %v3617_v26 }
 0x34a   : > { %5651 = vmatprep.mubr.msk.bf16.mxu0 %vm6033_vm6, %v6032_v7 }
 0x351   : > { %5652 = vmatmul.mubr.msk.bf16.gmra.mrb[60].mxu0 %vm2173_vm2, %v3618_v30 }
 0x352   : > { %5659 = vmatprep.mubr.msk.bf16.mxu0 %vm6033_vm6, %v6032_v7 }
 0x359   : > { %5660 = vmatmul.mubr.msk.bf16.vlgmr.msra.gmra.mrb[52].mxu0 %vm2173_vm2, %v3811_v35 }
 0x35a   : > { %5672 = vmatpush3.bf16.msra.mxu0 %v5990_v34  ;;  %5663 = vmatprep.mubr.msk.bf16.mxu0 %vm6033_vm6, %v6032_v7 }
 0x35b   : > { %5673 = vmatprep.subr.bf16.mxu0 %v6032_v7 }
 0x35e   : > { %5674 = vmatpush3.bf16.msra.mxu0 %v5991_v36 }
 0x361   : > { %5664 = vmatmul.mubr.msk.bf16.gmra.mrb[56].mxu0 %vm2173_vm2, %v3812_v39 }
 0x362   : > { %5667 = vmatprep.mubr.msk.bf16.mxu0 %vm6033_vm6, %v6032_v7 }
 0x369   : > { %5668 = vmatmul.mubr.msk.bf16.gmra.mrb[60].mxu0 %vm2173_vm2, %v3813_v41 }
 0x36a   : > { %5675 = vmatprep.mubr.msk.bf16.mxu0 %vm6033_vm6, %v6032_v7 }
 0x371   : > { %5676 = vmatmul.mubr.msk.bf16.vlgmr.msra.gmra.mrb[52].mxu0 %vm2173_vm2, %v3915_v43 }
 0x372   : > { %5679 = vmatprep.mubr.msk.bf16.mxu0 %vm6033_vm6, %v6032_v7 }
 0x379   : > { %5680 = vmatmul.mubr.msk.bf16.gmra.mrb[56].mxu0 %vm2173_vm2, %v3916_v47  ;;  %v5998_v47 = vld [vmem:[%s6839_s8 + $0x30] sm:$0xff]  }
 0x37a   : > { %5683 = vmatprep.mubr.msk.bf16.mxu0 %vm6033_vm6, %v6032_v7 }
 0x381   : > { %5684 = vmatmul.mubr.msk.bf16.gmra.mrb[60].mxu0 %vm2173_vm2, %v3917_v51  ;;  %v5999_v51 = vld [vmem:[%s6839_s8 + $0x38] sm:$0xff]  }
 0x444   : > { %v3978_v55 = vpop.f32.mrb[52].mxu0 }
 0x445   : > { %v4012_v57 = vmul.f32 %v5074_v54, %v3978_v55  ;;  %v5677_v58 = vpop.f32.mrb[53].mxu0  ;;  %v6001_v55 = vld [vmem:[%s6841_s10 + $0x18] sm:$0xff]  }
 0x446   : > { %v3981_v59 = vpop.f32.mrb[54].mxu0  ;;  %v5105_v58 = vld [vmem:[%s6840_s9 + $0x1] ss:$0 sm:$0xff] }
 0x447   : > { %v4023_v60 = vadd.f32 %v5075_v56, %v4012_v57  ;;  %v4013_v61 = vmul.f32 %v5074_v54, %v3981_v59  ;;  %v5678_v62 = vpop.f32.mrb[55].mxu0 }
 0x448   : > { %v4424_v62 = vadd.s32 4294967295, %v6372_v25 }
 0x449   : > { %v4029_v63 = vmax.f32 %v4023_v60, 0.0  ;;  %v4024_v0 = vadd.f32 %v5075_v56, %v4013_v61 }
 0x44a   : > { %vm4427_vm13 = vcmp.ge.s32.totalorder %v4424_v62, 0 }
 0x44b   : > { %v4072_v1 = vsel %vm4042_vm10, %v4029_v63, 0.0  ;;  %v4030_v2 = vmax.f32 %v4024_v0, 0.0 }
 0x44c   : > { %4078 = vst.msk [vmem:[#allocation5] sm:$0xff] %vm2173_vm2, %v4072_v1  ;;  %v3986_v3 = vpop.f32.mrb[56].mxu0 }
 0x44d   : > { %4079 = vst.msk [vmem:[#allocation5 + $0x8] sm:$0xff] %vm2173_vm2, %v4030_v2  ;;  %v4014_v4 = vmul.f32 %v5074_v54, %v3986_v3  ;;  %v5681_v6 = vpop.f32.mrb[57].mxu0 }
 0x44e   : > { %v3989_v8 = vpop.f32.mrb[58].mxu0 }
 0x44f   : > { %v4025_v9 = vadd.f32 %v5075_v56, %v4014_v4  ;;  %v4015_v10 = vmul.f32 %v5074_v54, %v3989_v8  ;;  %v5682_v11 = vpop.f32.mrb[59].mxu0 }
 0x451   : > { %v4031_v5 = vmax.f32 %v4025_v9, 0.0  ;;  %v4026_v23 = vadd.f32 %v5075_v56, %v4015_v10 }
 0x453   : > { %4080 = vst.msk [vmem:[#allocation5 + $0x10] sm:$0xff] %vm2173_vm2, %v4031_v5  ;;  %v4032_v13 = vmax.f32 %v4026_v23, 0.0 }
 0x454   : > { %v3994_v14 = vpop.f32.mrb[60].mxu0  ;;  %v4096_v33 = vld [vmem:[#allocation5 + $0x1] ss:$2 sm:$0xff]  ;;  %v4084_v19 = vld [vmem:[#allocation5] ss:$2 sm:$0xff] }
 0x455   : > { %4081 = vst.msk [vmem:[#allocation5 + $0x18] sm:$0xff] %vm2173_vm2, %v4032_v13  ;;  %v4016_v15 = vmul.f32 %v5074_v54, %v3994_v14  ;;  %v5685_v16 = vpop.f32.mrb[61].mxu0  ;;  %v6003_v14 = vld [vmem:[%s6841_s10 + $0x8] sm:$0xff]  }
 0x456   : > { %v3997_v17 = vpop.f32.mrb[62].mxu0 }
 0x457   : > { %v4027_v24 = vadd.f32 %v5075_v56, %v4016_v15  ;;  %v4017_v26 = vmul.f32 %v5074_v54, %v3997_v17  ;;  %v5686_v27 = vpop.f32.mrb[63].mxu0  ;;  %v6000_v54 = vld [vmem:[%s6841_s10 + $0x10] sm:$0xff]   ;;  %v6004_v17 = vld [vmem:[%s6841_s10 + $0x20] sm:$0xff]  }
 0x459   : > { %v4033_v28 = vmax.f32 %v4027_v24, 0.0  ;;  %v4028_v30 = vadd.f32 %v5075_v56, %v4017_v26  ;;  %v1790_v56 = vadd.s32 16, %v6372_v25  ;;  %v6005_v24 = vld [vmem:[%s6841_s10 + $0x28] sm:$0xff]  }
 0x45a   : > { %v4241_v45 = vld [vmem:[#allocation5 + $0x2] ss:$2 sm:$0xff]  ;;  %v4323_v22 = vld [vmem:[#allocation5 + $0x3] ss:$2 sm:$0xff] }
 0x45b   : > { %4082 = vst.msk [vmem:[#allocation5 + $0x20] sm:$0xff] %vm2173_vm2, %v4033_v28  ;;  %v4034_v32 = vmax.f32 %v4028_v30, 0.0  ;;  %v4426_v59 = vadd.s32 4294967295, %v1790_v56  ;;  %v6006_v28 = vld [vmem:[%s6841_s10 + $0x30] sm:$0xff]  }
 0x45c   : > { %v4098_v34 = vld [vmem:[#allocation5 + $0x11] ss:$2 sm:$0xff]  ;;  %v4086_v37 = vld [vmem:[#allocation5 + $0x10] ss:$2 sm:$0xff] }
 0x45d   : > { %v4077_v35 = vsel %vm4053_vm11, %v4034_v32, 0.0  ;;  %v4101_v36 = vpack.c.bf16 %v4098_v34, %v4096_v33  ;;  %v4089_v41 = vpack.c.bf16 %v4086_v37, %v4084_v19  ;;  %vm4432_vm12 = vcmp.lt.s32.totalorder %v4426_v59, 20  ;;  %v6007_v32 = vld [vmem:[%s6841_s10 + $0x38] sm:$0xff]  }
 0x45e   : > { %4083 = vst.msk [vmem:[#allocation5 + $0x28] sm:$0x3f] %vm3603_vm7, %v4077_v35 }
 0x45f   : > { %5691 = vmatprep.mubr.msk.bf16.mxu1 %vm2173_vm2, %v4101_v36  ;;  %v5130_v36 = vld [vmem:[%s6842_s11] ss:$0 sm:$0xff] }
 0x462   : > { %v4243_v43 = vld [vmem:[#allocation5 + $0x12] ss:$2 sm:$0xff]  ;;  %v4325_v49 = vld [vmem:[#allocation5 + $0x13] ss:$2 sm:$0xff] }
 0x463   : > { %v4246_v21 = vpack.c.bf16 %v4243_v43, %v4241_v45  ;;  %v4328_v29 = vpack.c.bf16 %v4325_v49, %v4323_v22 }
 0x465   : > { %v4100_v38 = vld [vmem:[#allocation5 + $0x21] ss:$2 sm:$0x3f]  ;;  %v4088_v42 = vld [vmem:[#allocation5 + $0x20] ss:$2 sm:$0x3f] }
 0x466   : > { %v4102_v39 = vpack.c.bf16 %v4100_v38, %v4100_v38  ;;  %v4090_v44 = vpack.c.bf16 %v4088_v42, %v4088_v42  ;;  %v4245_v48 = vld [vmem:[#allocation5 + $0x22] ss:$2 sm:$0x3f]  ;;  %v4327_v52 = vld [vmem:[#allocation5 + $0x23] ss:$2 sm:$0x3f] }
 0x467   : > { %v4247_v50 = vpack.c.bf16 %v4245_v48, %v4245_v48  ;;  %v5131_v38 = vld [vmem:[%s6842_s11 + $0x1] ss:$0 sm:$0xff] }
 0x468   : > { %5692 = vmatmul.mubr.msk.bf16.vlgmr.msra.gmra.mrb[20].mxu1 %vm2173_vm2, %v4102_v39 }
 0x469   : > { %5696 = vmatpush3.bf16.msra.mxu1 %v5994_v53  ;;  %5699 = vmatprep.mubr.msk.bf16.mxu1 %vm2173_vm2, %v4089_v41  ;;  %v4329_v53 = vpack.c.bf16 %v4327_v52, %v4327_v52 }
 0x46a   : > { %5697 = vmatprep.subr.bf16.mxu1 %v5995_v40 }
 0x46d   : > { %5698 = vmatpush3.bf16.msra.mxu1 %v5995_v40 }
 0x46e   : > { %5703 = vmatprep.subr.bf16.mxu1 %v5996_v20 }
 0x474   : > { %5700 = vmatmul.mubr.msk.bf16.vlgmr.msra.gmra.mrb[20].mxu1 %vm2173_vm2, %v4090_v44 }
 0x475   : > { %5704 = vmatpush3.bf16.msra.mxu1 %v5996_v20  ;;  %5707 = vmatprep.mubr.msk.bf16.mxu1 %vm2173_vm2, %v4246_v21 }
 0x476   : > { %5705 = vmatprep.subr.bf16.mxu1 %v5997_v46 }
 0x479   : > { %5706 = vmatpush3.bf16.msra.mxu1 %v5997_v46 }
 0x47a   : > { %5711 = vmatprep.subr.bf16.mxu1 %v5998_v47 }
 0x480   : > { %5708 = vmatmul.mubr.msk.bf16.vlgmr.msra.gmra.mrb[20].mxu1 %vm2173_vm2, %v4247_v50 }
 0x481   : > { %5712 = vmatpush3.bf16.msra.mxu1 %v5998_v47  ;;  %5715 = vmatprep.mubr.msk.bf16.mxu1 %vm2173_vm2, %v4328_v29 }
 0x482   : > { %5713 = vmatprep.subr.bf16.mxu1 %v5999_v51 }
 0x485   : > { %5714 = vmatpush3.bf16.msra.mxu1 %v5999_v51 }
 0x486   : > { %5719 = vmatprep.subr.bf16.mxu1 %v6032_v7 }
 0x48c   : > { %5716 = vmatmul.mubr.msk.bf16.vlgmr.msra.gmra.mrb[20].mxu1 %vm2173_vm2, %v4329_v53 }
 0x48d   : > { %5723 = vmatprep.mubr.msk.bf16.mxu1 %vm6033_vm6, %v6032_v7  ;;  %5720 = vmatpush3.bf16.msra.mxu1 %v6000_v54 }
 0x48e   : > { %5721 = vmatprep.subr.bf16.mxu1 %v6032_v7 }
 0x491   : > { %5722 = vmatpush3.bf16.msra.mxu1 %v6001_v55 }
 0x492   : > { %5727 = vmatprep.subr.bf16.mxu1 %v6032_v7 }
 0x55f   : > { %v5717_v57 = vpop.f32.mrb[20].mxu1 }
 0x560   : > { %v4411_v60 = vmul.f32 %v5717_v57, %v5104_v31  ;;  %v4387_v61 = vpop.f32.mrb[21].mxu1 }
 0x561   : > { %v4409_v63 = vmul.f32 %v5104_v31, %v4387_v61  ;;  %v5718_v0 = vpop.f32.mrb[22].mxu1 }
 0x562   : > { %v4419_v1 = vadd.f32 %v5105_v58, %v4411_v60  ;;  %v4390_v2 = vpop.f32.mrb[23].mxu1 }
 0x563   : > { %v4417_v3 = vadd.f32 %v5105_v58, %v4409_v63  ;;  %v4410_v4 = vmul.f32 %v5104_v31, %v4390_v2 }
 0x564   : > { %v4422_v6 = vmax.f32 %v4419_v1, 0.0 }
 0x565   : > { %v4420_v8 = vmax.f32 %v4417_v3, 0.0  ;;  %v4418_v9 = vadd.f32 %v5105_v58, %v4410_v4 }
 0x566   : > { %v4444_v10 = vsel %vm4432_vm12, %v4422_v6, 0.0 }
 0x567   : > { %4447 = vst.msk [vmem:[#allocation6 + $0x10] sm:$0x3f] %vm3603_vm7, %v4444_v10  ;;  %v4442_v11 = vsel %vm4427_vm13, %v4420_v8, 0.0  ;;  %v4421_v5 = vmax.f32 %v4418_v9, 0.0 }
 0x568   : > { %4445 = vst.msk [vmem:[#allocation6] sm:$0xff] %vm2173_vm2, %v4442_v11 }
 0x569   : > { %4446 = vst.msk [vmem:[#allocation6 + $0x8] sm:$0xff] %vm2173_vm2, %v4421_v5 }
 0x56e   : > { %v4459_v23 = vld [vmem:[#allocation6 + $0x11] ss:$2 sm:$0x3]  ;;  %v4450_v16 = vld [vmem:[#allocation6 + $0x10] ss:$2 sm:$0x3] }
 0x56f   : > { %v4581_v27 = vld [vmem:[#allocation6 + $0x12] ss:$2 sm:$0x3]  ;;  %v4649_v34 = vld [vmem:[#allocation6 + $0x13] ss:$2 sm:$0x3] }
 0x570   : > { %v4457_v25 = vld [vmem:[#allocation6 + $0x1] ss:$2 sm:$0xff]  ;;  %v4448_v15 = vld [vmem:[#allocation6] ss:$2 sm:$0xff] }
 0x571   : > { %v4460_v13 = vpack.c.bf16 %v4459_v23, %v4457_v25  ;;  %v4451_v18 = vpack.c.bf16 %v4450_v16, %v4448_v15  ;;  %v4579_v26 = vld [vmem:[#allocation6 + $0x2] ss:$2 sm:$0xff]  ;;  %v4647_v33 = vld [vmem:[#allocation6 + $0x3] ss:$2 sm:$0xff] }
 0x572   : > { %v4582_v30 = vpack.c.bf16 %v4581_v27, %v4579_v26  ;;  %v4650_v35 = vpack.c.bf16 %v4649_v34, %v4647_v33 }
 0x573   : > { %5724 = vmatmul.mubr.msk.bf16.vlgmr.msra.gmra.mrb[24].mxu1 %vm2173_vm2, %v4460_v13 }
 0x574   : > { %5728 = vmatpush3.bf16.msra.mxu1 %v6002_v12  ;;  %5731 = vmatprep.mubr.msk.bf16.mxu1 %vm6033_vm6, %v6032_v7 }
 0x575   : > { %5729 = vmatprep.subr.bf16.mxu1 %v6032_v7 }
 0x578   : > { %5730 = vmatpush3.bf16.msra.mxu1 %v6003_v14 }
 0x579   : > { %5735 = vmatprep.subr.bf16.mxu1 %v6032_v7 }
 0x57f   : > { %5732 = vmatmul.mubr.msk.bf16.vlgmr.msra.gmra.mrb[24].mxu1 %vm2173_vm2, %v4451_v18 }
 0x580   : > { %5736 = vmatpush3.bf16.msra.mxu1 %v6004_v17  ;;  %5739 = vmatprep.mubr.msk.bf16.mxu1 %vm6033_vm6, %v6032_v7 }
 0x581   : > { %5737 = vmatprep.subr.bf16.mxu1 %v6032_v7 }
 0x584   : > { %5738 = vmatpush3.bf16.msra.mxu1 %v6005_v24 }
 0x585   : > { %5743 = vmatprep.subr.bf16.mxu1 %v6032_v7 }
 0x58b   : > { %5740 = vmatmul.mubr.msk.bf16.vlgmr.msra.gmra.mrb[24].mxu1 %vm2173_vm2, %v4582_v30 }
 0x58c   : > { %5744 = vmatpush3.bf16.msra.mxu1 %v6006_v28  ;;  %5747 = vmatprep.mubr.msk.bf16.mxu1 %vm6033_vm6, %v6032_v7 }
 0x58d   : > { %5745 = vmatprep.subr.bf16.mxu1 %v6032_v7 }
 0x590   : > { %5746 = vmatpush3.bf16.msra.mxu1 %v6007_v32 }
 0x597   : > { %5748 = vmatmul.mubr.msk.bf16.vlgmr.msra.gmra.mrb[24].mxu1 %vm2173_vm2, %v4650_v35 }
 0x66a   : > { %v4705_v37 = vpop.f32.mrb[24].mxu1 }
 0x66b   : > { %v4719_v39 = vmul.f32 %v5130_v36, %v4705_v37  ;;  %v5749_v19 = vpop.f32.mrb[25].mxu1 }
 0x66c   : > { %v4708_v40 = vpop.f32.mrb[26].mxu1 }
 0x66d   : > { %v4726_v7 = vadd.f32 %v5131_v38, %v4719_v39  ;;  %v4720_v41 = vmul.f32 %v5130_v36, %v4708_v40  ;;  %v5750_v20 = vpop.f32.mrb[27].mxu1 }
 0x66f   : > { %v4728_v42 = vmax.f32 %v4726_v7, 0.0  ;;  %v4727_v43 = vadd.f32 %v5131_v38, %v4720_v41 }
 0x671   : > { %4730 = vst.msk [vmem:[%s521_s28] sm:$0xff] %vm2173_vm2, %v4728_v42  ;;  %v4729_v44 = vmax.f32 %v4727_v43, 0.0 }
 0x673   : > { %4732 = vst.msk [vmem:[%s521_s28 + $0x8] sm:$0x3] %vm4731_vm14, %v4729_v44 }
 0x674 PF: > { %s22_s23 = sadd.s32 1, %s6030_s23   ;;  %s6844_s21 = smov %s6026_s22 }
 0x675   : > { %p19_p5 = scmp.ge.s32.totalorder %s22_s23, 4   ;;  %s6845_s22 = smov %s6847_s24 }
 0x677   :  { %21 = sbr.rel (!%p19_p5) target bundleno = 2 (0x2), region = 254 }

</bundles_post_ra>
